<compile_context>
chip_gen: v7x
topology: tpu7x:2x2x1
jax: 0.10.0
libtpu: 0.0.40
codegen_flags: <defaults>
</compile_context>

<pallas_src>
import jax
import jax.numpy as jnp
from jax.experimental import pallas as pl
from jax.experimental.pallas import tpu as pltpu


def _round_up(n, m):
    return ((n + m - 1) // m) * m


# --------------------------- fused Pallas kernel -----------------------------

def dqn_fused_kernel(img_ref, astate_ref, wconv_ref, whead_ref, wlast_ref,
                     bias_ref, out_ref):
    # Conv + folded BN (scale in the weight, shift via the appended ones-row)
    # as ONE dense MXU matmul:
    #   z_T (C*P, TILE_B) = wconv (C*P, Kpad) @ img_aug (Kpad, TILE_B)
    z = jnp.dot(wconv_ref[...], img_ref[...],
                preferred_element_type=jnp.float32)
    # ReLU in f32 on the VPU (v5e has no bf16 VPU).
    feat = jnp.maximum(z, 0.0)
    # Head matmul, lane axis = batch (lane-dense store):
    #   out_T (O, TILE_B) = whead (O, C*P) @ feat (C*P, TILE_B)
    y = jnp.dot(whead_ref[...], feat.astype(whead_ref.dtype),
                preferred_element_type=jnp.float32)
    # concat(agent_state) realised as a split matmul: + w_last * a_state + bias.
    out_ref[...] = y + wlast_ref[...] * astate_ref[...] + bias_ref[...]


# --------------------------- one-time weight prep -----------------------------

def prepare_params(params, h, w, compute_dtype=jnp.bfloat16):
    """Hoisted, input-independent preprocessing of all weights."""
    eps = 1e-5
    kh = kw = 3
    stride = 2
    oh = (h - kh) // stride + 1
    ow = (w - kw) // stride + 1
    P = oh * ow
    HW = h * w
    C = params["conv_w"].shape[0]                      # 16

    scale = params["bn_gamma"] / jnp.sqrt(params["bn_var"] + eps)               # (C,)
    shift = (params["conv_b"] - params["bn_mean"]) * scale + params["bn_beta"]  # (C,)

    # Fold BN scale into the conv taps, then scatter each tap to its flat-image
    # offset so the strided VALID conv becomes one dense matmul whose output
    # row order (c*P + p) is exactly torch's NCHW flatten.  (im2col is thereby
    # absorbed into the weight; the kernel input is just the flat image.)
    wc = params["conv_w"].reshape(C, kh * kw) * scale[:, None]        # (C, 9)
    oy = jnp.arange(oh)
    ox = jnp.arange(ow)
    wdense = jnp.zeros((C, oh, ow, h, w), jnp.float32)
    for ky in range(kh):
        ey = jnp.zeros((oh, h), jnp.float32).at[oy, stride * oy + ky].set(1.0)
        for kx in range(kw):
            ex = jnp.zeros((ow, w), jnp.float32).at[ox, stride * ox + kx].set(1.0)
            wdense = wdense + jnp.einsum("c,yh,xw->cyxhw",
                                         wc[:, ky * kw + kx], ey, ex)
    wdense = wdense.reshape(C * P, HW)                                # (F, H*W)

    # Fold the BN shift (incl. conv bias) as an extra weight column multiplying
    # a ones-row appended to the flat image; zero-pad the contraction dim to a
    # sublane multiple so activation loads are unmasked.
    shift_col = jnp.repeat(shift, P).reshape(C * P, 1)
    k_in = HW + 1
    kpad = _round_up(k_in, 8)
    wconv = jnp.concatenate(
        [wdense, shift_col, jnp.zeros((C * P, kpad - k_in), jnp.float32)],
        axis=1)                                                       # (F, Kpad)

    O = params["head_w"].shape[0]
    whead = params["head_w"][:, :C * P]                               # (O, F) as-is
    wlast = params["head_w"][:, C * P:].reshape(O, 1)                 # (O, 1)
    bias = params["head_b"].reshape(O, 1)                             # (O, 1)

    return dict(
        wconv=wconv.astype(compute_dtype),
        whead=whead.astype(compute_dtype),
        wlast=wlast.astype(jnp.float32),
        bias=bias.astype(jnp.float32),
        hw=HW,
        compute_dtype=compute_dtype,
    )


# --------------------------- tiling policy ------------------------------------

def _device_kind():
    try:
        return jax.devices()[0].device_kind.lower()
    except Exception:  # pragma: no cover - defensive
        return ""


def _choose_tiling(batch):
    kind = _device_kind()
    wide_mxu = ("v6" in kind) or ("v7" in kind)   # 256-lane MXU on v6e / v7x
    two_tc = "v7" in kind                          # 2 TensorCores per chip
    tile_full = 256 if wide_mxu else 128           # v5e (and default): 128
    if two_tc and batch <= tile_full:
        # Split a single-tile batch into two 128-wide tiles so the "parallel"
        # grid axis actually shards across both TensorCores.
        tile_b = tile_full // 2
        n_tiles = 2
    else:
        tile_b = tile_full
        n_tiles = max(1, -(-batch // tile_b))
    return tile_b, n_tiles, tile_b * n_tiles


# --------------------------- glue (plain JAX) ---------------------------------

def dqn_forward(prep, x, agent_state):
    B = x.shape[0]
    cd = prep["compute_dtype"]
    F, kpad = prep["wconv"].shape
    O = prep["whead"].shape[0]
    HW = prep["hw"]

    tile_b, n_tiles, b_pad = _choose_tiling(B)

    # No im2col: just flatten + transpose the image (batch on the LANE axis),
    # append the ones-row that carries the folded BN shift, zero-pad the
    # contraction dim to kpad and the batch to whole lane-dense tiles.
    img_T = x.reshape(B, HW).T.astype(cd)                              # (HW, B)
    img_aug = (jnp.zeros((kpad, b_pad), cd)
               .at[:HW, :B].set(img_T)
               .at[HW, :].set(jnp.ones((b_pad,), cd)))
    astate = (jnp.zeros((1, b_pad), jnp.float32)
              .at[0, :B].set(jnp.asarray(agent_state, jnp.float32).reshape(B)))

    out_T = pl.pallas_call(
        dqn_fused_kernel,
        out_shape=jax.ShapeDtypeStruct((O, b_pad), jnp.float32),
        grid=(n_tiles,),
        in_specs=[
            pl.BlockSpec((kpad, tile_b), lambda i: (0, i)),   # flat image (+ones row)
            pl.BlockSpec((1, tile_b), lambda i: (0, i)),      # agent_state
            pl.BlockSpec((F, kpad), lambda i: (0, 0)),        # dense conv weight (BN folded)
            pl.BlockSpec((O, F), lambda i: (0, 0)),           # head weight
            pl.BlockSpec((O, 1), lambda i: (0, 0)),           # head col for agent_state
            pl.BlockSpec((O, 1), lambda i: (0, 0)),           # head bias
        ],
        out_specs=pl.BlockSpec((O, tile_b), lambda i: (0, i)),
        compiler_params=pltpu.CompilerParams(
            dimension_semantics=("parallel",),
            vmem_limit_bytes=8 * 1024 * 1024,   # working set <= ~5 MiB
        ),
    )(img_aug, astate, prep["wconv"], prep["whead"],
      prep["wlast"], prep["bias"])

    return out_T[:, :B].T                                              # (B, O)


# --------------------------- init & reference ---------------------------------

def init_params(key, h, w, outputs):
    kcw, kcb, kg, kb, km, kv, khw, khb = jax.random.split(key, 8)
    convh = (h - 3) // 2 + 1
    convw = (w - 3) // 2 + 1
    lin_in = convh * convw * 16 + 1
    return dict(
        conv_w=0.1 * jax.random.normal(kcw, (16, 1, 3, 3), jnp.float32),   # OIHW
        conv_b=0.1 * jax.random.normal(kcb, (16,), jnp.float32),
        bn_gamma=1.0 + 0.1 * jax.random.normal(kg, (16,), jnp.float32),
        bn_beta=0.1 * jax.random.normal(kb, (16,), jnp.float32),
        bn_mean=0.1 * jax.random.normal(km, (16,), jnp.float32),
        bn_var=jnp.abs(jax.random.normal(kv, (16,), jnp.float32)) + 0.5,
        head_w=0.05 * jax.random.normal(khw, (outputs, lin_in), jnp.float32),  # torch layout
        head_b=0.05 * jax.random.normal(khb, (outputs,), jnp.float32),
    )


def dqn_reference(params, x, agent_state):
    # Pure-JAX reference mirroring the torch module literally (eval-mode BN).
    eps = 1e-5
    B = x.shape[0]
    z = jax.lax.conv_general_dilated(
        x, params["conv_w"], window_strides=(2, 2), padding="VALID",
        dimension_numbers=("NCHW", "OIHW", "NCHW"))
    z = z + params["conv_b"][None, :, None, None]
    z = (z - params["bn_mean"][None, :, None, None]) * (
        params["bn_gamma"] / jnp.sqrt(params["bn_var"] + eps))[None, :, None, None]
    z = z + params["bn_beta"][None, :, None, None]
    z = jnp.maximum(z, 0.0)
    flat = z.reshape(B, -1)                              # NCHW flatten (channel-major)
    astate = jnp.asarray(agent_state, jnp.float32).reshape(B, 1)
    feat = jnp.concatenate([flat, astate], axis=1)
    return feat @ params["head_w"].T + params["head_b"]


if __name__ == "__main__":
    key = jax.random.PRNGKey(0)
    kx, ka, kp, kx2, ka2 = jax.random.split(key, 5)
    H, W, OUT = 16, 16, 4
    params = init_params(kp, H, W, OUT)

    # --- small batch, f32 compute path (tight numerical check) ---
    B = 2
    x = jax.random.normal(kx, (B, 1, H, W), jnp.float32)
    a_state = jax.random.uniform(ka, (B,), jnp.float32)
    prep_f32 = prepare_params(params, H, W, compute_dtype=jnp.float32)
    out = jax.block_until_ready(dqn_forward(prep_f32, x, a_state))
    ref = dqn_reference(params, x, a_state)
    assert out.shape == (B, OUT)
    assert jnp.allclose(out, ref, atol=1e-4, rtol=1e-4), (out, ref)

    # --- bf16 MXU-operand path (f32 accumulation), looser tolerance ---
    prep_bf16 = prepare_params(params, H, W, compute_dtype=jnp.bfloat16)
    out16 = jax.block_until_ready(dqn_forward(prep_bf16, x, a_state))
    assert jnp.allclose(out16, ref, atol=5e-2, rtol=5e-2), (out16, ref)

    # --- larger batch exercising the batch grid (>=2 tiles on every gen) ---
    B2 = 300
    x2 = jax.random.normal(kx2, (B2, 1, H, W), jnp.float32)
    a2 = jax.random.uniform(ka2, (B2,), jnp.float32)
    out2 = jax.block_until_ready(dqn_forward(prep_bf16, x2, a2))
    ref2 = dqn_reference(params, x2, a2)
    assert out2.shape == (B2, OUT)
    assert jnp.allclose(out2, ref2, atol=5e-2, rtol=5e-2)

    print("KERNEL_OK")
</pallas_src>

<mosaic_0001>
module attributes {stable_mosaic.version = 11 : i64} {
  func.func @dqn_fused_kernel(%arg0: i32, %arg1: memref<264x128xf32, #tpu.memory_space<vmem>>, %arg2: memref<1x128xf32, #tpu.memory_space<vmem>>, %arg3: memref<784x264xf32, #tpu.memory_space<vmem>>, %arg4: memref<4x784xf32, #tpu.memory_space<vmem>>, %arg5: memref<4x1xf32, #tpu.memory_space<vmem>>, %arg6: memref<4x1xf32, #tpu.memory_space<vmem>>, %arg7: memref<4x128xf32, #tpu.memory_space<vmem>>) attributes {dimension_semantics = [#tpu.dimension_semantics<parallel>], iteration_bounds = array<i64: 1>, scalar_prefetch = 0 : i64, scratch_operands = 0 : i64, tpu.core_type = #tpu.core_type<tc>, window_params = [{transform_indices = @transform_0, window_bounds = array<i64: 264, 128>}, {transform_indices = @transform_1, window_bounds = array<i64: 1, 128>}, {pipeline_mode = #tpu.pipeline_mode<synchronous>, transform_indices = @transform_2, window_bounds = array<i64: 784, 264>}, {pipeline_mode = #tpu.pipeline_mode<synchronous>, transform_indices = @transform_3, window_bounds = array<i64: 4, 784>}, {pipeline_mode = #tpu.pipeline_mode<synchronous>, transform_indices = @transform_4, window_bounds = array<i64: 4, 1>}, {pipeline_mode = #tpu.pipeline_mode<synchronous>, transform_indices = @transform_5, window_bounds = array<i64: 4, 1>}, {transform_indices = @transform_6, window_bounds = array<i64: 4, 128>}]} {
    %c0 = arith.constant 0 : index
    %c0_0 = arith.constant 0 : index
    %0 = vector.load %arg3[%c0, %c0_0] : memref<784x264xf32, #tpu.memory_space<vmem>>, vector<784x264xf32>
    %c0_1 = arith.constant 0 : index
    %c0_2 = arith.constant 0 : index
    %1 = vector.load %arg1[%c0_1, %c0_2] : memref<264x128xf32, #tpu.memory_space<vmem>>, vector<264x128xf32>
    %cst = arith.constant dense<0.000000e+00> : vector<784x128xf32>
    %2 = tpu.matmul %0, %1, %cst {dimension_numbers = #tpu.dot_dimension_numbers<[1], [0], [0], [1], [0, 0, 1, 1], [], []>} : vector<784x264xf32>, vector<264x128xf32>, vector<784x128xf32> -> vector<784x128xf32>
    %cst_3 = arith.constant 0.000000e+00 : f32
    %3 = vector.broadcast %cst_3 : f32 to vector<784x128xf32>
    %4 = arith.maximumf %2, %3 : vector<784x128xf32>
    %c0_4 = arith.constant 0 : index
    %c0_5 = arith.constant 0 : index
    %5 = vector.load %arg4[%c0_4, %c0_5] : memref<4x784xf32, #tpu.memory_space<vmem>>, vector<4x784xf32>
    %cst_6 = arith.constant dense<0.000000e+00> : vector<4x128xf32>
    %6 = tpu.matmul %5, %4, %cst_6 {dimension_numbers = #tpu.dot_dimension_numbers<[1], [0], [0], [1], [0, 0, 1, 1], [], []>} : vector<4x784xf32>, vector<784x128xf32>, vector<4x128xf32> -> vector<4x128xf32>
    %c0_7 = arith.constant 0 : index
    %c0_8 = arith.constant 0 : index
    %7 = vector.load %arg5[%c0_7, %c0_8] : memref<4x1xf32, #tpu.memory_space<vmem>>, vector<4x1xf32>
    %c0_9 = arith.constant 0 : index
    %c0_10 = arith.constant 0 : index
    %8 = vector.load %arg2[%c0_9, %c0_10] : memref<1x128xf32, #tpu.memory_space<vmem>>, vector<1x128xf32>
    %9 = vector.broadcast %7 : vector<4x1xf32> to vector<4x128xf32>
    %10 = vector.broadcast %8 : vector<1x128xf32> to vector<4x128xf32>
    %11 = arith.mulf %9, %10 : vector<4x128xf32>
    %12 = arith.addf %6, %11 : vector<4x128xf32>
    %c0_11 = arith.constant 0 : index
    %c0_12 = arith.constant 0 : index
    %13 = vector.load %arg6[%c0_11, %c0_12] : memref<4x1xf32, #tpu.memory_space<vmem>>, vector<4x1xf32>
    %14 = vector.broadcast %13 : vector<4x1xf32> to vector<4x128xf32>
    %15 = arith.addf %12, %14 : vector<4x128xf32>
    %c0_13 = arith.constant 0 : index
    %c0_14 = arith.constant 0 : index
    %16 = vector.load %arg7[%c0_13, %c0_14] : memref<4x128xf32, #tpu.memory_space<vmem>>, vector<4x128xf32>
    tpu.vector_store %arg7[%c0_13, %c0_14], %15 {strides = array<i32>} : memref<4x128xf32, #tpu.memory_space<vmem>>, vector<4x128xf32>,
    return
  }
  func.func @transform_0(%arg0: i32) -> (i32, i32) {
    %c0_i32 = arith.constant 0 : i32
    %c0_i32_0 = arith.constant 0 : i32
    return %c0_i32, %arg0 : i32, i32
  }
  func.func @transform_1(%arg0: i32) -> (i32, i32) {
    %c0_i32 = arith.constant 0 : i32
    %c0_i32_0 = arith.constant 0 : i32
    return %c0_i32, %arg0 : i32, i32
  }
  func.func @transform_2(%arg0: i32) -> (i32, i32) {
    %c0_i32 = arith.constant 0 : i32
    %c0_i32_0 = arith.constant 0 : i32
    %c0_i32_1 = arith.constant 0 : i32
    return %c0_i32, %c0_i32_0 : i32, i32
  }
  func.func @transform_3(%arg0: i32) -> (i32, i32) {
    %c0_i32 = arith.constant 0 : i32
    %c0_i32_0 = arith.constant 0 : i32
    %c0_i32_1 = arith.constant 0 : i32
    return %c0_i32, %c0_i32_0 : i32, i32
  }
  func.func @transform_4(%arg0: i32) -> (i32, i32) {
    %c0_i32 = arith.constant 0 : i32
    %c0_i32_0 = arith.constant 0 : i32
    %c0_i32_1 = arith.constant 0 : i32
    return %c0_i32, %c0_i32_0 : i32, i32
  }
  func.func @transform_5(%arg0: i32) -> (i32, i32) {
    %c0_i32 = arith.constant 0 : i32
    %c0_i32_0 = arith.constant 0 : i32
    %c0_i32_1 = arith.constant 0 : i32
    return %c0_i32, %c0_i32_0 : i32, i32
  }
  func.func @transform_6(%arg0: i32) -> (i32, i32) {
    %c0_i32 = arith.constant 0 : i32
    %c0_i32_0 = arith.constant 0 : i32
    return %c0_i32, %arg0 : i32, i32
  }
}

</mosaic_0001>

<bundles_post_ra>
// kernel: tpu_custom_call.1
= control target key start
LH: loop header
LB: loop body
LE: loop exit
PB: predicated region body
PF: predicated region fallthrough
CT: control target
= control target key end

     0   :  { %v4363_v3 = vmov 0.0|0.0   ;;  %s4356_s0 = inlined_call_operand.vmem [shape: f32[264,128], index: 0, kind: input, shape index: {}]   ;;  %s4357_s1 = inlined_call_operand.vmem [shape: f32[1,128], index: 1, kind: input, shape index: {}]   ;;  %s4358_s2 = inlined_call_operand.vmem [shape: f32[784,264], index: 2, kind: input, shape index: {}]   ;;  %s4359_s3 = inlined_call_operand.vmem [shape: f32[4,784], index: 3, kind: input, shape index: {}]   ;;  %s4360_s4 = inlined_call_operand.vmem [shape: f32[4,1], index: 4, kind: input, shape index: {}]   ;;  %s4361_s5 = inlined_call_operand.vmem [shape: f32[4,1], index: 5, kind: input, shape index: {}]   ;;  %s4362_s6 = inlined_call_operand.hbm [shape: f32[4,128], index: 6, kind: output, shape index: {}]  }
   0x1   :  { %v318_v0 = vld [vmem:[%s4356_s0] sm:$0xff]  ;;  %v319_v1 = vld [vmem:[%s4356_s0 + $0x8] sm:$0xff]  ;;  %v320_v2 = vld [vmem:[%s4356_s0 + $0x10] sm:$0xff]  ;;  %2650 = vmatprep.subr.bf16.mxu0 %v4363_v3  ;;  %2797 = vmatprep.subr.bf16.mxu1 %v4363_v3 }
   0x2   :  { %v2651_v4 = vpack.c.bf16 %v319_v1, %v318_v0  ;;  %v321_v5 = vld [vmem:[%s4356_s0 + $0x18] sm:$0xff]  ;;  %v322_v7 = vld [vmem:[%s4356_s0 + $0x20] sm:$0xff]  ;;  %v323_v8 = vld [vmem:[%s4356_s0 + $0x28] sm:$0xff] }
   0x3   :  { %v2654_v6 = vpack.c.bf16 %v321_v5, %v320_v2  ;;  %v2657_v9 = vpack.c.bf16 %v323_v8, %v322_v7  ;;  %v324_v10 = vld [vmem:[%s4356_s0 + $0x30] sm:$0xff]  ;;  %v325_v11 = vld [vmem:[%s4356_s0 + $0x38] sm:$0xff]  ;;  %v25_v12 = vld [vmem:[%s4358_s2 + $0x8] sm:$0xff] }
   0x4   :  { %2652 = vmatpush1.bf16.msra.mxu0 %v2651_v4  ;;  %2813 = vmatpush1.bf16.msra.mxu1 %v2651_v4  ;;  %v2660_v13 = vpack.c.bf16 %v325_v11, %v324_v10  ;;  %v274_v14 = vld [vmem:[%s4358_s2 + $0x7d0] sm:$0xff]  ;;  %v326_v15 = vld [vmem:[%s4356_s0 + $0x40] sm:$0xff]  ;;  %v327_v16 = vld [vmem:[%s4356_s0 + $0x48] sm:$0xff] }
   0x5   :  { %2653 = vmatprep.subr.bf16.mxu0 %v4363_v3  ;;  %2798 = vmatprep.subr.bf16.mxu1 %v4363_v3  ;;  %v2663_v17 = vpack.c.bf16 %v327_v16, %v326_v15  ;;  %v328_v18 = vld [vmem:[%s4356_s0 + $0x50] sm:$0xff]  ;;  %v329_v19 = vld [vmem:[%s4356_s0 + $0x58] sm:$0xff]  ;;  %v330_v21 = vld [vmem:[%s4356_s0 + $0x60] sm:$0xff] }
   0x6   :  { %710 = vmatprep.mubr.f32.mxu0 %v25_v12  ;;  %1125 = vmatprep.mubr.f32.mxu1 %v274_v14  ;;  %v2666_v20 = vpack.c.bf16 %v329_v19, %v328_v18  ;;  %v331_v22 = vld [vmem:[%s4356_s0 + $0x68] sm:$0xff]  ;;  %v332_v24 = vld [vmem:[%s4356_s0 + $0x70] sm:$0xff]  ;;  %v333_v25 = vld [vmem:[%s4356_s0 + $0x78] sm:$0xff] }
   0x7   :  { %v2669_v23 = vpack.c.bf16 %v331_v22, %v330_v21  ;;  %v2672_v26 = vpack.c.bf16 %v333_v25, %v332_v24  ;;  %v334_v27 = vld [vmem:[%s4356_s0 + $0x80] sm:$0xff]  ;;  %v335_v28 = vld [vmem:[%s4356_s0 + $0x88] sm:$0xff]  ;;  %v336_v30 = vld [vmem:[%s4356_s0 + $0x90] sm:$0xff] }
   0x8   :  { %2655 = vmatpush1.bf16.msra.mxu0 %v2654_v6  ;;  %2814 = vmatpush1.bf16.msra.mxu1 %v2654_v6  ;;  %v2675_v29 = vpack.c.bf16 %v335_v28, %v334_v27  ;;  %v337_v31 = vld [vmem:[%s4356_s0 + $0x98] sm:$0xff]  ;;  %v338_v33 = vld [vmem:[%s4356_s0 + $0xa0] sm:$0xff]  ;;  %v339_v34 = vld [vmem:[%s4356_s0 + $0xa8] sm:$0xff] }
   0x9   :  { %2656 = vmatprep.subr.bf16.mxu0 %v4363_v3  ;;  %2799 = vmatprep.subr.bf16.mxu1 %v4363_v3  ;;  %v2678_v32 = vpack.c.bf16 %v337_v31, %v336_v30  ;;  %v2681_v35 = vpack.c.bf16 %v339_v34, %v338_v33  ;;  %v340_v36 = vld [vmem:[%s4356_s0 + $0xb0] sm:$0xff]  ;;  %v341_v37 = vld [vmem:[%s4356_s0 + $0xb8] sm:$0xff]  ;;  %v342_v39 = vld [vmem:[%s4356_s0 + $0xc0] sm:$0xff] }
   0xa   :  { %v2684_v38 = vpack.c.bf16 %v341_v37, %v340_v36  ;;  %v343_v40 = vld [vmem:[%s4356_s0 + $0xc8] sm:$0xff]  ;;  %v344_v42 = vld [vmem:[%s4356_s0 + $0xd0] sm:$0xff]  ;;  %v345_v43 = vld [vmem:[%s4356_s0 + $0xd8] sm:$0xff] }
   0xb   :  { %v2687_v41 = vpack.c.bf16 %v343_v40, %v342_v39 }
   0xc   :  { %2658 = vmatpush1.bf16.msra.mxu0 %v2657_v9  ;;  %2815 = vmatpush1.bf16.msra.mxu1 %v2657_v9 }
   0xd   :  { %2659 = vmatprep.subr.bf16.mxu0 %v4363_v3  ;;  %2800 = vmatprep.subr.bf16.mxu1 %v4363_v3 }
  0x10   :  { %2661 = vmatpush1.bf16.msra.mxu0 %v2660_v13  ;;  %2816 = vmatpush1.bf16.msra.mxu1 %v2660_v13 }
  0x11   :  { %2662 = vmatprep.subr.bf16.mxu0 %v4363_v3  ;;  %2801 = vmatprep.subr.bf16.mxu1 %v4363_v3 }
  0x14   :  { %2664 = vmatpush1.bf16.msra.mxu0 %v2663_v17  ;;  %2817 = vmatpush1.bf16.msra.mxu1 %v2663_v17 }
  0x15   :  { %2665 = vmatprep.subr.bf16.mxu0 %v4363_v3  ;;  %2802 = vmatprep.subr.bf16.mxu1 %v4363_v3 }
  0x18   :  { %2667 = vmatpush1.bf16.msra.mxu0 %v2666_v20  ;;  %2818 = vmatpush1.bf16.msra.mxu1 %v2666_v20 }
  0x19   :  { %2668 = vmatprep.subr.bf16.mxu0 %v4363_v3  ;;  %2803 = vmatprep.subr.bf16.mxu1 %v4363_v3 }
  0x1c   :  { %2670 = vmatpush1.bf16.msra.mxu0 %v2669_v23  ;;  %2819 = vmatpush1.bf16.msra.mxu1 %v2669_v23 }
  0x1d   :  { %2671 = vmatprep.subr.bf16.mxu0 %v4363_v3  ;;  %2804 = vmatprep.subr.bf16.mxu1 %v4363_v3 }
  0x20   :  { %2673 = vmatpush1.bf16.msra.mxu0 %v2672_v26  ;;  %2820 = vmatpush1.bf16.msra.mxu1 %v2672_v26 }
  0x21   :  { %2674 = vmatprep.subr.bf16.mxu0 %v4363_v3  ;;  %2805 = vmatprep.subr.bf16.mxu1 %v4363_v3 }
  0x24   :  { %2676 = vmatpush1.bf16.msra.mxu0 %v2675_v29  ;;  %2821 = vmatpush1.bf16.msra.mxu1 %v2675_v29 }
  0x25   :  { %2677 = vmatprep.subr.bf16.mxu0 %v4363_v3  ;;  %2806 = vmatprep.subr.bf16.mxu1 %v4363_v3 }
  0x28   :  { %2679 = vmatpush1.bf16.msra.mxu0 %v2678_v32  ;;  %2822 = vmatpush1.bf16.msra.mxu1 %v2678_v32 }
  0x29   :  { %2680 = vmatprep.subr.bf16.mxu0 %v4363_v3  ;;  %2807 = vmatprep.subr.bf16.mxu1 %v4363_v3 }
  0x2c   :  { %2682 = vmatpush1.bf16.msra.mxu0 %v2681_v35  ;;  %2823 = vmatpush1.bf16.msra.mxu1 %v2681_v35 }
  0x2d   :  { %2683 = vmatprep.subr.bf16.mxu0 %v4363_v3  ;;  %2808 = vmatprep.subr.bf16.mxu1 %v4363_v3 }
  0x30   :  { %2685 = vmatpush1.bf16.msra.mxu0 %v2684_v38  ;;  %2824 = vmatpush1.bf16.msra.mxu1 %v2684_v38 }
  0x31   :  { %2686 = vmatprep.subr.bf16.mxu0 %v4363_v3  ;;  %2809 = vmatprep.subr.bf16.mxu1 %v4363_v3 }
  0x32   :  { %11 = vsyncpa [#allocation3], 0  ;;  %v2690_v44 = vpack.c.bf16 %v345_v43, %v344_v42  ;;  %v346_v45 = vld [vmem:[%s4356_s0 + $0xe0] sm:$0xff]  ;;  %v347_v46 = vld [vmem:[%s4356_s0 + $0xe8] sm:$0xff]  ;;  %vm351_vm0 = vcmask 64512   ;;  %vm2864_vm1 = vmmov 0  }
  0x33   :  { %v2693_v47 = vpack.c.bf16 %v347_v46, %v346_v45  ;;  %v348_v48 = vld [vmem:[%s4356_s0 + $0xf0] sm:$0xff]  ;;  %v349_v49 = vld [vmem:[%s4356_s0 + $0xf8] sm:$0xff]  ;;  %v350_v51 = vld [vmem:[%s4356_s0 + $0x100] sm:$0xff]  ;;  %vm1882_vm2 = vcmask 130048  }
  0x34   :  { %2688 = vmatpush1.bf16.msra.mxu0 %v2687_v41  ;;  %2825 = vmatpush1.bf16.msra.mxu1 %v2687_v41  ;;  %v2696_v50 = vpack.c.bf16 %v349_v49, %v348_v48  ;;  %v24_v52 = vld [vmem:[%s4358_s2] sm:$0xff]  ;;  %v273_v53 = vld [vmem:[%s4358_s2 + $0x7c8] sm:$0xff]  ;;  %v27_v56 = vld [vmem:[%s4358_s2 + $0x18] sm:$0xff] }
  0x35   :  { %2689 = vmatprep.subr.bf16.mxu0 %v4363_v3  ;;  %2810 = vmatprep.subr.bf16.mxu1 %v4363_v3  ;;  %v28_v54 = vld [vmem:[%s4358_s2 + $0x20] sm:$0xff]  ;;  %v277_v55 = vld [vmem:[%s4358_s2 + $0x7e8] sm:$0xff]  ;;  %v31_v58 = vld [vmem:[%s4358_s2 + $0x38] sm:$0xff] }
  0x36   :  { %v276_v57 = vld [vmem:[%s4358_s2 + $0x7e0] sm:$0xff]  ;;  %v30_v60 = vld [vmem:[%s4358_s2 + $0x30] sm:$0xff]  ;;  %v279_v61 = vld [vmem:[%s4358_s2 + $0x7f8] sm:$0xff] }
  0x37   :  { %v280_v59 = vld [vmem:[%s4358_s2 + $0x800] sm:$0xff]  ;;  %v34_v62 = vld [vmem:[%s4358_s2 + $0x50] sm:$0xff]  ;;  %v283_v63 = vld [vmem:[%s4358_s2 + $0x818] sm:$0xff] }
  0x38   :  { %2691 = vmatpush1.bf16.msra.mxu0 %v2690_v44  ;;  %2826 = vmatpush1.bf16.msra.mxu1 %v2690_v44  ;;  %v33_v0 = vld [vmem:[%s4358_s2 + $0x48] sm:$0xff]  ;;  %v282_v1 = vld [vmem:[%s4358_s2 + $0x810] sm:$0xff]  ;;  %v36_v5 = vld [vmem:[%s4358_s2 + $0x60] sm:$0xff] }
  0x39   :  { %2692 = vmatprep.subr.bf16.mxu0 %v4363_v3  ;;  %2811 = vmatprep.subr.bf16.mxu1 %v4363_v3  ;;  %v37_v2 = vld [vmem:[%s4358_s2 + $0x68] sm:$0xff]  ;;  %v286_v4 = vld [vmem:[%s4358_s2 + $0x830] sm:$0xff]  ;;  %v40_v7 = vld [vmem:[%s4358_s2 + $0x80] sm:$0xff] }
  0x3a   :  { %v285_v6 = vld [vmem:[%s4358_s2 + $0x828] sm:$0xff]  ;;  %v39_v9 = vld [vmem:[%s4358_s2 + $0x78] sm:$0xff]  ;;  %v288_v10 = vld [vmem:[%s4358_s2 + $0x840] sm:$0xff] }
  0x3b   :  { %v289_v8 = vld [vmem:[%s4358_s2 + $0x848] sm:$0xff]  ;;  %v43_v11 = vld [vmem:[%s4358_s2 + $0x98] sm:$0xff]  ;;  %v292_v12 = vld [vmem:[%s4358_s2 + $0x860] sm:$0xff] }
  0x3c   :  { %2694 = vmatpush1.bf16.msra.mxu0 %v2693_v47  ;;  %2827 = vmatpush1.bf16.msra.mxu1 %v2693_v47  ;;  %v42_v13 = vld [vmem:[%s4358_s2 + $0x90] sm:$0xff]  ;;  %v291_v14 = vld [vmem:[%s4358_s2 + $0x858] sm:$0xff]  ;;  %v45_v17 = vld [vmem:[%s4358_s2 + $0xa8] sm:$0xff] }
  0x3d   :  { %2695 = vmatprep.subr.bf16.mxu0 %v4363_v3  ;;  %2812 = vmatprep.subr.bf16.mxu1 %v4363_v3  ;;  %v46_v15 = vld [vmem:[%s4358_s2 + $0xb0] sm:$0xff]  ;;  %v295_v16 = vld [vmem:[%s4358_s2 + $0x878] sm:$0xff]  ;;  %v49_v19 = vld [vmem:[%s4358_s2 + $0xc8] sm:$0xff] }
  0x3e   :  { %v294_v18 = vld [vmem:[%s4358_s2 + $0x870] sm:$0xff]  ;;  %v48_v21 = vld [vmem:[%s4358_s2 + $0xc0] sm:$0xff]  ;;  %v297_v22 = vld [vmem:[%s4358_s2 + $0x888] sm:$0xff] }
  0x3f   :  { %v298_v20 = vld [vmem:[%s4358_s2 + $0x890] sm:$0xff]  ;;  %v52_v23 = vld [vmem:[%s4358_s2 + $0xe0] sm:$0xff]  ;;  %v301_v24 = vld [vmem:[%s4358_s2 + $0x8a8] sm:$0xff] }
  0x40   :  { %2697 = vmatpush1.bf16.msra.mxu0 %v2696_v50  ;;  %2828 = vmatpush1.bf16.msra.mxu1 %v2696_v50  ;;  %v51_v25 = vld [vmem:[%s4358_s2 + $0xd8] sm:$0xff]  ;;  %v300_v26 = vld [vmem:[%s4358_s2 + $0x8a0] sm:$0xff]  ;;  %v54_v29 = vld [vmem:[%s4358_s2 + $0xf0] sm:$0xff] }
  0x41   :  { %2494 = vmatprep.subr.mxu1 %v350_v51  ;;  %v55_v27 = vld [vmem:[%s4358_s2 + $0xf8] sm:$0xff]  ;;  %v304_v28 = vld [vmem:[%s4358_s2 + $0x8c0] sm:$0xff]  ;;  %v58_v31 = vld [vmem:[%s4358_s2 + $0x110] sm:$0xff] }
  0x42   :  { %v303_v30 = vld [vmem:[%s4358_s2 + $0x8b8] sm:$0xff]  ;;  %v57_v33 = vld [vmem:[%s4358_s2 + $0x108] sm:$0xff]  ;;  %v306_v34 = vld [vmem:[%s4358_s2 + $0x8d0] sm:$0xff] }
  0x43   :  { %711 = vmatmul.mubr.f32.vlgmr.msra.gmra.mrb[0].mxu0 %v24_v52  ;;  %1126 = vmatmul.mubr.f32.vlgmr.msra.gmra.mrb[0].mxu1 %v273_v53  ;;  %v307_v32 = vld [vmem:[%s4358_s2 + $0x8d8] sm:$0xff]  ;;  %v61_v35 = vld [vmem:[%s4358_s2 + $0x128] sm:$0xff]  ;;  %v310_v36 = vld [vmem:[%s4358_s2 + $0x8f0] sm:$0xff] }
  0x44   :  { %715 = vmatprep.mubr.f32.mxu0 %v28_v54  ;;  %1130 = vmatprep.mubr.f32.mxu1 %v277_v55  ;;  %v60_v37 = vld [vmem:[%s4358_s2 + $0x120] sm:$0xff]  ;;  %v309_v38 = vld [vmem:[%s4358_s2 + $0x8e8] sm:$0xff]  ;;  %v63_v41 = vld [vmem:[%s4358_s2 + $0x138] sm:$0xff] }
  0x45   :  { %2495 = vmatpush3.msra.mxu1 %v350_v51  ;;  %v64_v39 = vld [vmem:[%s4358_s2 + $0x140] sm:$0xff]  ;;  %v313_v40 = vld [vmem:[%s4358_s2 + $0x908] sm:$0xff]  ;;  %v67_v43 = vld [vmem:[%s4358_s2 + $0x158] sm:$0xff] }
  0x46   :  { %v312_v42 = vld [vmem:[%s4358_s2 + $0x900] sm:$0xff]  ;;  %v66_v45 = vld [vmem:[%s4358_s2 + $0x150] sm:$0xff]  ;;  %v315_v46 = vld [vmem:[%s4358_s2 + $0x918] sm:$0xff] }
  0x47   :  { %716 = vmatmul.mubr.f32.gmra.mrb[2].mxu0 %v27_v56  ;;  %1131 = vmatmul.mubr.f32.gmra.mrb[2].mxu1 %v276_v57  ;;  %v316_v44 = vld [vmem:[%s4358_s2 + $0x920] sm:$0xff]  ;;  %v70_v47 = vld [vmem:[%s4358_s2 + $0x170] sm:$0xff]  ;;  %v69_v49 = vld [vmem:[%s4358_s2 + $0x168] sm:$0xff] }
  0x48   :  { %720 = vmatprep.mubr.f32.mxu0 %v31_v58  ;;  %1135 = vmatprep.mubr.f32.mxu1 %v280_v59  ;;  %v26_v48 = vld [vmem:[%s4358_s2 + $0x10] sm:$0xff]  ;;  %v29_v50 = vld [vmem:[%s4358_s2 + $0x28] sm:$0xff]  ;;  %v32_v52 = vld [vmem:[%s4358_s2 + $0x40] sm:$0xff] }
  0x49   :  { %v73_v51 = vld [vmem:[%s4358_s2 + $0x188] sm:$0xff]  ;;  %v72_v53 = vld [vmem:[%s4358_s2 + $0x180] sm:$0xff]  ;;  %v35_v54 = vld [vmem:[%s4358_s2 + $0x58] sm:$0xff] }
  0x4a   :  { %v76_v55 = vld [vmem:[%s4358_s2 + $0x1a0] sm:$0xff]  ;;  %v38_v56 = vld [vmem:[%s4358_s2 + $0x70] sm:$0xff]  ;;  %v75_v57 = vld [vmem:[%s4358_s2 + $0x198] sm:$0xff] }
  0x4b   :  { %721 = vmatmul.mubr.f32.gmra.mrb[4].mxu0 %v30_v60  ;;  %1136 = vmatmul.mubr.f32.gmra.mrb[4].mxu1 %v279_v61  ;;  %v41_v58 = vld [vmem:[%s4358_s2 + $0x88] sm:$0xff]  ;;  %v79_v59 = vld [vmem:[%s4358_s2 + $0x1b8] sm:$0xff]  ;;  %v44_v60 = vld [vmem:[%s4358_s2 + $0xa0] sm:$0xff] }
  0x4c   :  { %725 = vmatprep.mubr.f32.mxu0 %v34_v62  ;;  %1140 = vmatprep.mubr.f32.mxu1 %v283_v63  ;;  %v78_v61 = vld [vmem:[%s4358_s2 + $0x1b0] sm:$0xff]  ;;  %v47_v62 = vld [vmem:[%s4358_s2 + $0xb8] sm:$0xff] }
  0x4d   :  { %v82_v63 = vld [vmem:[%s4358_s2 + $0x1d0] sm:$0xff] }
  0x4f   :  { %726 = vmatmul.mubr.f32.gmra.mrb[6].mxu0 %v33_v0  ;;  %1141 = vmatmul.mubr.f32.gmra.mrb[6].mxu1 %v282_v1  ;;  %v50_v0 = vld [vmem:[%s4358_s2 + $0xd0] sm:$0xff]  ;;  %v81_v1 = vld [vmem:[%s4358_s2 + $0x1c8] sm:$0xff] }
  0x50   :  { %730 = vmatprep.mubr.f32.mxu0 %v37_v2  ;;  %1145 = vmatprep.mubr.f32.mxu1 %v286_v4  ;;  %v53_v2 = vld [vmem:[%s4358_s2 + $0xe8] sm:$0xff] }
  0x51   :  { %v85_v4 = vld [vmem:[%s4358_s2 + $0x1e8] sm:$0xff] }
  0x53   :  { %731 = vmatmul.mubr.f32.gmra.mrb[8].mxu0 %v36_v5  ;;  %1146 = vmatmul.mubr.f32.gmra.mrb[8].mxu1 %v285_v6  ;;  %v56_v5 = vld [vmem:[%s4358_s2 + $0x100] sm:$0xff] }
  0x54   :  { %735 = vmatprep.mubr.f32.mxu0 %v40_v7  ;;  %1150 = vmatprep.mubr.f32.mxu1 %v289_v8  ;;  %v84_v6 = vld [vmem:[%s4358_s2 + $0x1e0] sm:$0xff]  ;;  %v59_v7 = vld [vmem:[%s4358_s2 + $0x118] sm:$0xff] }
  0x55   :  { %v88_v8 = vld [vmem:[%s4358_s2 + $0x200] sm:$0xff] }
  0x57   :  { %736 = vmatmul.mubr.f32.gmra.mrb[10].mxu0 %v39_v9  ;;  %1151 = vmatmul.mubr.f32.gmra.mrb[10].mxu1 %v288_v10  ;;  %v62_v9 = vld [vmem:[%s4358_s2 + $0x130] sm:$0xff]  ;;  %v87_v10 = vld [vmem:[%s4358_s2 + $0x1f8] sm:$0xff] }
  0x58   :  { %740 = vmatprep.mubr.f32.mxu0 %v43_v11  ;;  %1155 = vmatprep.mubr.f32.mxu1 %v292_v12  ;;  %v65_v11 = vld [vmem:[%s4358_s2 + $0x148] sm:$0xff]  ;;  %v91_v12 = vld [vmem:[%s4358_s2 + $0x218] sm:$0xff] }
  0x5b   :  { %741 = vmatmul.mubr.f32.gmra.mrb[12].mxu0 %v42_v13  ;;  %1156 = vmatmul.mubr.f32.gmra.mrb[12].mxu1 %v291_v14  ;;  %v68_v13 = vld [vmem:[%s4358_s2 + $0x160] sm:$0xff]  ;;  %v90_v14 = vld [vmem:[%s4358_s2 + $0x210] sm:$0xff] }
  0x5c   :  { %745 = vmatprep.mubr.f32.mxu0 %v46_v15  ;;  %1160 = vmatprep.mubr.f32.mxu1 %v295_v16  ;;  %v71_v15 = vld [vmem:[%s4358_s2 + $0x178] sm:$0xff]  ;;  %v94_v16 = vld [vmem:[%s4358_s2 + $0x230] sm:$0xff] }
  0x5f   :  { %746 = vmatmul.mubr.f32.gmra.mrb[14].mxu0 %v45_v17  ;;  %1161 = vmatmul.mubr.f32.gmra.mrb[14].mxu1 %v294_v18  ;;  %v74_v17 = vld [vmem:[%s4358_s2 + $0x190] sm:$0xff]  ;;  %v93_v18 = vld [vmem:[%s4358_s2 + $0x228] sm:$0xff] }
  0x60   :  { %750 = vmatprep.mubr.f32.mxu0 %v49_v19  ;;  %1165 = vmatprep.mubr.f32.mxu1 %v298_v20  ;;  %v77_v19 = vld [vmem:[%s4358_s2 + $0x1a8] sm:$0xff] }
  0x61   :  { %v97_v20 = vld [vmem:[%s4358_s2 + $0x248] sm:$0xff] }
  0x63   :  { %751 = vmatmul.mubr.f32.gmra.mrb[16].mxu0 %v48_v21  ;;  %1166 = vmatmul.mubr.f32.gmra.mrb[16].mxu1 %v297_v22  ;;  %v80_v21 = vld [vmem:[%s4358_s2 + $0x1c0] sm:$0xff] }
  0x64   :  { %755 = vmatprep.mubr.f32.mxu0 %v52_v23  ;;  %1170 = vmatprep.mubr.f32.mxu1 %v301_v24  ;;  %v96_v22 = vld [vmem:[%s4358_s2 + $0x240] sm:$0xff]  ;;  %v83_v23 = vld [vmem:[%s4358_s2 + $0x1d8] sm:$0xff] }
  0x65   :  { %v100_v24 = vld [vmem:[%s4358_s2 + $0x260] sm:$0xff] }
  0x67   :  { %756 = vmatmul.mubr.f32.gmra.mrb[18].mxu0 %v51_v25  ;;  %1171 = vmatmul.mubr.f32.gmra.mrb[18].mxu1 %v300_v26  ;;  %v86_v25 = vld [vmem:[%s4358_s2 + $0x1f0] sm:$0xff]  ;;  %v99_v26 = vld [vmem:[%s4358_s2 + $0x258] sm:$0xff] }
  0x68   :  { %760 = vmatprep.mubr.f32.mxu0 %v55_v27  ;;  %1175 = vmatprep.mubr.f32.mxu1 %v304_v28  ;;  %v89_v27 = vld [vmem:[%s4358_s2 + $0x208] sm:$0xff]  ;;  %v103_v28 = vld [vmem:[%s4358_s2 + $0x278] sm:$0xff] }
  0x6b   :  { %761 = vmatmul.mubr.f32.gmra.mrb[20].mxu0 %v54_v29  ;;  %1176 = vmatmul.mubr.f32.gmra.mrb[20].mxu1 %v303_v30  ;;  %v92_v29 = vld [vmem:[%s4358_s2 + $0x220] sm:$0xff]  ;;  %v102_v30 = vld [vmem:[%s4358_s2 + $0x270] sm:$0xff] }
  0x6c   :  { %765 = vmatprep.mubr.f32.mxu0 %v58_v31  ;;  %1180 = vmatprep.mubr.f32.mxu1 %v307_v32  ;;  %v95_v31 = vld [vmem:[%s4358_s2 + $0x238] sm:$0xff]  ;;  %v106_v32 = vld [vmem:[%s4358_s2 + $0x290] sm:$0xff] }
  0x6f   :  { %766 = vmatmul.mubr.f32.gmra.mrb[22].mxu0 %v57_v33  ;;  %1181 = vmatmul.mubr.f32.gmra.mrb[22].mxu1 %v306_v34  ;;  %v98_v33 = vld [vmem:[%s4358_s2 + $0x250] sm:$0xff]  ;;  %v105_v34 = vld [vmem:[%s4358_s2 + $0x288] sm:$0xff] }
  0x70   :  { %770 = vmatprep.mubr.f32.mxu0 %v61_v35  ;;  %1185 = vmatprep.mubr.f32.mxu1 %v310_v36  ;;  %v101_v35 = vld [vmem:[%s4358_s2 + $0x268] sm:$0xff] }
  0x71   :  { %v109_v36 = vld [vmem:[%s4358_s2 + $0x2a8] sm:$0xff] }
  0x73   :  { %771 = vmatmul.mubr.f32.gmra.mrb[24].mxu0 %v60_v37  ;;  %1186 = vmatmul.mubr.f32.gmra.mrb[24].mxu1 %v309_v38  ;;  %v104_v37 = vld [vmem:[%s4358_s2 + $0x280] sm:$0xff] }
  0x74   :  { %775 = vmatprep.mubr.f32.mxu0 %v64_v39  ;;  %1190 = vmatprep.mubr.f32.mxu1 %v313_v40  ;;  %v108_v38 = vld [vmem:[%s4358_s2 + $0x2a0] sm:$0xff]  ;;  %v107_v39 = vld [vmem:[%s4358_s2 + $0x298] sm:$0xff] }
  0x75   :  { %v112_v40 = vld [vmem:[%s4358_s2 + $0x2c0] sm:$0xff] }
  0x77   :  { %776 = vmatmul.mubr.f32.gmra.mrb[26].mxu0 %v63_v41  ;;  %1191 = vmatmul.mubr.f32.gmra.mrb[26].mxu1 %v312_v42  ;;  %v110_v41 = vld [vmem:[%s4358_s2 + $0x2b0] sm:$0xff]  ;;  %v111_v42 = vld [vmem:[%s4358_s2 + $0x2b8] sm:$0xff] }
  0x78   :  { %780 = vmatprep.mubr.f32.mxu0 %v67_v43  ;;  %1195 = vmatprep.mubr.f32.mxu1 %v316_v44  ;;  %v113_v43 = vld [vmem:[%s4358_s2 + $0x2c8] sm:$0xff]  ;;  %v115_v44 = vld [vmem:[%s4358_s2 + $0x2d8] sm:$0xff] }
  0x7b   :  { %781 = vmatmul.mubr.f32.gmra.mrb[28].mxu0 %v66_v45  ;;  %1196 = vmatmul.mubr.f32.gmra.mrb[28].mxu1 %v315_v46  ;;  %v116_v45 = vld [vmem:[%s4358_s2 + $0x2e0] sm:$0xff]  ;;  %v114_v46 = vld [vmem:[%s4358_s2 + $0x2d0] sm:$0xff] }
  0x7c   :  { %785 = vmatprep.mubr.f32.mxu0 %v70_v47  ;;  %2496 = vmatprep.mubr.msk.f32.mxu1 %vm351_vm0, %v26_v48  ;;  %v119_v47 = vld [vmem:[%s4358_s2 + $0x2f8] sm:$0xff]  ;;  %v118_v48 = vld [vmem:[%s4358_s2 + $0x2f0] sm:$0xff] }
  0x7f   :  { %786 = vmatmul.mubr.f32.gmra.mrb[30].mxu0 %v69_v49  ;;  %2497 = vmatmul.mubr.msk.f32.vlgmr.msra.gmra.mrb[30].mxu1 %vm351_vm0, %v29_v50  ;;  %v122_v49 = vld [vmem:[%s4358_s2 + $0x310] sm:$0xff]  ;;  %v117_v50 = vld [vmem:[%s4358_s2 + $0x2e8] sm:$0xff] }
  0x80   :  { %790 = vmatprep.mubr.f32.mxu0 %v73_v51  ;;  %2499 = vmatprep.mubr.msk.f32.mxu1 %vm351_vm0, %v32_v52  ;;  %v125_v51 = vld [vmem:[%s4358_s2 + $0x328] sm:$0xff] }
  0x81   :  { %v121_v52 = vld [vmem:[%s4358_s2 + $0x308] sm:$0xff] }
  0x83   :  { %791 = vmatmul.mubr.f32.gmra.mrb[32].mxu0 %v72_v53  ;;  %2500 = vmatmul.mubr.msk.f32.gmra.mrb[32].mxu1 %vm351_vm0, %v35_v54  ;;  %v128_v53 = vld [vmem:[%s4358_s2 + $0x340] sm:$0xff] }
  0x84   :  { %795 = vmatprep.mubr.f32.mxu0 %v76_v55  ;;  %2502 = vmatprep.mubr.msk.f32.mxu1 %vm351_vm0, %v38_v56  ;;  %v120_v54 = vld [vmem:[%s4358_s2 + $0x300] sm:$0xff]  ;;  %v131_v55 = vld [vmem:[%s4358_s2 + $0x358] sm:$0xff] }
  0x85   :  { %v124_v56 = vld [vmem:[%s4358_s2 + $0x320] sm:$0xff] }
  0x87   :  { %796 = vmatmul.mubr.f32.gmra.mrb[34].mxu0 %v75_v57  ;;  %2503 = vmatmul.mubr.msk.f32.gmra.mrb[34].mxu1 %vm351_vm0, %v41_v58  ;;  %v134_v57 = vld [vmem:[%s4358_s2 + $0x370] sm:$0xff]  ;;  %v123_v58 = vld [vmem:[%s4358_s2 + $0x318] sm:$0xff] }
  0x88   :  { %800 = vmatprep.mubr.f32.mxu0 %v79_v59  ;;  %2505 = vmatprep.mubr.msk.f32.mxu1 %vm351_vm0, %v44_v60  ;;  %v137_v59 = vld [vmem:[%s4358_s2 + $0x388] sm:$0xff]  ;;  %v127_v60 = vld [vmem:[%s4358_s2 + $0x338] sm:$0xff] }
  0x8b   :  { %801 = vmatmul.mubr.f32.gmra.mrb[36].mxu0 %v78_v61  ;;  %2506 = vmatmul.mubr.msk.f32.gmra.mrb[36].mxu1 %vm351_vm0, %v47_v62  ;;  %v140_v61 = vld [vmem:[%s4358_s2 + $0x3a0] sm:$0xff]  ;;  %v126_v62 = vld [vmem:[%s4358_s2 + $0x330] sm:$0xff] }
  0x8c   :  { %805 = vmatprep.mubr.f32.mxu0 %v82_v63  ;;  %2508 = vmatprep.mubr.msk.f32.mxu1 %vm351_vm0, %v50_v0  ;;  %v143_v63 = vld [vmem:[%s4358_s2 + $0x3b8] sm:$0xff]  ;;  %v130_v0 = vld [vmem:[%s4358_s2 + $0x350] sm:$0xff] }
  0x8f   :  { %806 = vmatmul.mubr.f32.gmra.mrb[38].mxu0 %v81_v1  ;;  %2509 = vmatmul.mubr.msk.f32.gmra.mrb[38].mxu1 %vm351_vm0, %v53_v2  ;;  %v146_v1 = vld [vmem:[%s4358_s2 + $0x3d0] sm:$0xff]  ;;  %v129_v2 = vld [vmem:[%s4358_s2 + $0x348] sm:$0xff] }
  0x90   :  { %810 = vmatprep.mubr.f32.mxu0 %v85_v4  ;;  %2511 = vmatprep.mubr.msk.f32.mxu1 %vm351_vm0, %v56_v5  ;;  %v149_v4 = vld [vmem:[%s4358_s2 + $0x3e8] sm:$0xff] }
  0x91   :  { %v133_v5 = vld [vmem:[%s4358_s2 + $0x368] sm:$0xff] }
  0x93   :  { %811 = vmatmul.mubr.f32.gmra.mrb[40].mxu0 %v84_v6  ;;  %2512 = vmatmul.mubr.msk.f32.gmra.mrb[40].mxu1 %vm351_vm0, %v59_v7  ;;  %v152_v6 = vld [vmem:[%s4358_s2 + $0x400] sm:$0xff] }
  0x94   :  { %815 = vmatprep.mubr.f32.mxu0 %v88_v8  ;;  %2514 = vmatprep.mubr.msk.f32.mxu1 %vm351_vm0, %v62_v9  ;;  %v132_v7 = vld [vmem:[%s4358_s2 + $0x360] sm:$0xff]  ;;  %v155_v8 = vld [vmem:[%s4358_s2 + $0x418] sm:$0xff] }
  0x95   :  { %v136_v9 = vld [vmem:[%s4358_s2 + $0x380] sm:$0xff] }
  0x97   :  { %816 = vmatmul.mubr.f32.gmra.mrb[42].mxu0 %v87_v10  ;;  %2515 = vmatmul.mubr.msk.f32.gmra.mrb[42].mxu1 %vm351_vm0, %v65_v11  ;;  %v158_v10 = vld [vmem:[%s4358_s2 + $0x430] sm:$0xff]  ;;  %v135_v11 = vld [vmem:[%s4358_s2 + $0x378] sm:$0xff] }
  0x98   :  { %820 = vmatprep.mubr.f32.mxu0 %v91_v12  ;;  %2517 = vmatprep.mubr.msk.f32.mxu1 %vm351_vm0, %v68_v13  ;;  %v161_v12 = vld [vmem:[%s4358_s2 + $0x448] sm:$0xff]  ;;  %v139_v13 = vld [vmem:[%s4358_s2 + $0x398] sm:$0xff] }
  0x9b   :  { %821 = vmatmul.mubr.f32.gmra.mrb[44].mxu0 %v90_v14  ;;  %2518 = vmatmul.mubr.msk.f32.gmra.mrb[44].mxu1 %vm351_vm0, %v71_v15  ;;  %v164_v14 = vld [vmem:[%s4358_s2 + $0x460] sm:$0xff]  ;;  %v138_v15 = vld [vmem:[%s4358_s2 + $0x390] sm:$0xff] }
  0x9c   :  { %825 = vmatprep.mubr.f32.mxu0 %v94_v16  ;;  %2520 = vmatprep.mubr.msk.f32.mxu1 %vm351_vm0, %v74_v17  ;;  %v167_v16 = vld [vmem:[%s4358_s2 + $0x478] sm:$0xff]  ;;  %v142_v17 = vld [vmem:[%s4358_s2 + $0x3b0] sm:$0xff] }
  0x9f   :  { %826 = vmatmul.mubr.f32.gmra.mrb[46].mxu0 %v93_v18  ;;  %2521 = vmatmul.mubr.msk.f32.gmra.mrb[46].mxu1 %vm351_vm0, %v77_v19  ;;  %v170_v18 = vld [vmem:[%s4358_s2 + $0x490] sm:$0xff]  ;;  %v141_v19 = vld [vmem:[%s4358_s2 + $0x3a8] sm:$0xff] }
  0xa0   :  { %830 = vmatprep.mubr.f32.mxu0 %v97_v20  ;;  %2523 = vmatprep.mubr.msk.f32.mxu1 %vm351_vm0, %v80_v21  ;;  %v173_v20 = vld [vmem:[%s4358_s2 + $0x4a8] sm:$0xff] }
  0xa1   :  { %v145_v21 = vld [vmem:[%s4358_s2 + $0x3c8] sm:$0xff] }
  0xa3   :  { %831 = vmatmul.mubr.f32.gmra.mrb[48].mxu0 %v96_v22  ;;  %2524 = vmatmul.mubr.msk.f32.gmra.mrb[48].mxu1 %vm351_vm0, %v83_v23  ;;  %v176_v22 = vld [vmem:[%s4358_s2 + $0x4c0] sm:$0xff] }
  0xa4   :  { %835 = vmatprep.mubr.f32.mxu0 %v100_v24  ;;  %2526 = vmatprep.mubr.msk.f32.mxu1 %vm351_vm0, %v86_v25  ;;  %v144_v23 = vld [vmem:[%s4358_s2 + $0x3c0] sm:$0xff]  ;;  %v179_v24 = vld [vmem:[%s4358_s2 + $0x4d8] sm:$0xff] }
  0xa5   :  { %v148_v25 = vld [vmem:[%s4358_s2 + $0x3e0] sm:$0xff] }
  0xa7   :  { %836 = vmatmul.mubr.f32.gmra.mrb[50].mxu0 %v99_v26  ;;  %2527 = vmatmul.mubr.msk.f32.gmra.mrb[50].mxu1 %vm351_vm0, %v89_v27  ;;  %v182_v26 = vld [vmem:[%s4358_s2 + $0x4f0] sm:$0xff]  ;;  %v147_v27 = vld [vmem:[%s4358_s2 + $0x3d8] sm:$0xff] }
  0xa8   :  { %840 = vmatprep.mubr.f32.mxu0 %v103_v28  ;;  %2529 = vmatprep.mubr.msk.f32.mxu1 %vm351_vm0, %v92_v29  ;;  %v185_v28 = vld [vmem:[%s4358_s2 + $0x508] sm:$0xff]  ;;  %v151_v29 = vld [vmem:[%s4358_s2 + $0x3f8] sm:$0xff] }
  0xab   :  { %841 = vmatmul.mubr.f32.gmra.mrb[52].mxu0 %v102_v30  ;;  %2530 = vmatmul.mubr.msk.f32.gmra.mrb[52].mxu1 %vm351_vm0, %v95_v31  ;;  %v188_v30 = vld [vmem:[%s4358_s2 + $0x520] sm:$0xff]  ;;  %v150_v31 = vld [vmem:[%s4358_s2 + $0x3f0] sm:$0xff] }
  0xac   :  { %845 = vmatprep.mubr.f32.mxu0 %v106_v32  ;;  %2532 = vmatprep.mubr.msk.f32.mxu1 %vm351_vm0, %v98_v33  ;;  %v191_v32 = vld [vmem:[%s4358_s2 + $0x538] sm:$0xff]  ;;  %v154_v33 = vld [vmem:[%s4358_s2 + $0x410] sm:$0xff] }
  0xaf   :  { %846 = vmatmul.mubr.f32.gmra.mrb[54].mxu0 %v105_v34  ;;  %2533 = vmatmul.mubr.msk.f32.gmra.mrb[54].mxu1 %vm351_vm0, %v101_v35  ;;  %v194_v34 = vld [vmem:[%s4358_s2 + $0x550] sm:$0xff]  ;;  %v153_v35 = vld [vmem:[%s4358_s2 + $0x408] sm:$0xff] }
  0xb0   :  { %850 = vmatprep.mubr.f32.mxu0 %v109_v36  ;;  %2535 = vmatprep.mubr.msk.f32.mxu1 %vm351_vm0, %v104_v37  ;;  %v197_v36 = vld [vmem:[%s4358_s2 + $0x568] sm:$0xff] }
  0xb1   :  { %v157_v37 = vld [vmem:[%s4358_s2 + $0x428] sm:$0xff] }
  0xb3   :  { %851 = vmatmul.mubr.f32.gmra.mrb[56].mxu0 %v108_v38  ;;  %2536 = vmatmul.mubr.msk.f32.gmra.mrb[56].mxu1 %vm351_vm0, %v107_v39  ;;  %v200_v38 = vld [vmem:[%s4358_s2 + $0x580] sm:$0xff] }
  0xb4   :  { %855 = vmatprep.mubr.f32.mxu0 %v112_v40  ;;  %2538 = vmatprep.mubr.msk.f32.mxu1 %vm351_vm0, %v110_v41  ;;  %v156_v39 = vld [vmem:[%s4358_s2 + $0x420] sm:$0xff]  ;;  %v203_v40 = vld [vmem:[%s4358_s2 + $0x598] sm:$0xff] }
  0xb5   :  { %v160_v41 = vld [vmem:[%s4358_s2 + $0x440] sm:$0xff] }
  0xb7   :  { %856 = vmatmul.mubr.f32.gmra.mrb[58].mxu0 %v111_v42  ;;  %2539 = vmatmul.mubr.msk.f32.gmra.mrb[58].mxu1 %vm351_vm0, %v113_v43  ;;  %v206_v42 = vld [vmem:[%s4358_s2 + $0x5b0] sm:$0xff]  ;;  %v159_v43 = vld [vmem:[%s4358_s2 + $0x438] sm:$0xff] }
  0xb8   :  { %860 = vmatprep.mubr.f32.mxu0 %v115_v44  ;;  %2541 = vmatprep.mubr.msk.f32.mxu1 %vm351_vm0, %v116_v45  ;;  %v209_v44 = vld [vmem:[%s4358_s2 + $0x5c8] sm:$0xff]  ;;  %v163_v45 = vld [vmem:[%s4358_s2 + $0x458] sm:$0xff] }
  0xbb   :  { %861 = vmatmul.mubr.f32.gmra.mrb[60].mxu0 %v114_v46  ;;  %2542 = vmatmul.mubr.msk.f32.gmra.mrb[60].mxu1 %vm351_vm0, %v119_v47  ;;  %v212_v46 = vld [vmem:[%s4358_s2 + $0x5e0] sm:$0xff]  ;;  %v162_v47 = vld [vmem:[%s4358_s2 + $0x450] sm:$0xff] }
  0xbc   :  { %865 = vmatprep.mubr.f32.mxu0 %v118_v48  ;;  %2544 = vmatprep.mubr.msk.f32.mxu1 %vm351_vm0, %v122_v49  ;;  %v215_v48 = vld [vmem:[%s4358_s2 + $0x5f8] sm:$0xff]  ;;  %v166_v49 = vld [vmem:[%s4358_s2 + $0x470] sm:$0xff] }
  0xbf   :  { %866 = vmatmul.mubr.f32.gmra.mrb[62].mxu0 %v117_v50  ;;  %2545 = vmatmul.mubr.msk.f32.gmra.mrb[62].mxu1 %vm351_vm0, %v125_v51  ;;  %v218_v50 = vld [vmem:[%s4358_s2 + $0x610] sm:$0xff]  ;;  %v165_v51 = vld [vmem:[%s4358_s2 + $0x468] sm:$0xff] }
  0xc0   :  { %870 = vmatprep.mubr.f32.mxu0 %v121_v52  ;;  %2547 = vmatprep.mubr.msk.f32.mxu1 %vm351_vm0, %v128_v53  ;;  %v221_v52 = vld [vmem:[%s4358_s2 + $0x628] sm:$0xff] }
  0xc1   :  { %v169_v53 = vld [vmem:[%s4358_s2 + $0x488] sm:$0xff] }
  0xc3   :  { %871 = vmatmul.mubr.f32.gmra.mrb[64].mxu0 %v120_v54  ;;  %2548 = vmatmul.mubr.msk.f32.gmra.mrb[64].mxu1 %vm351_vm0, %v131_v55  ;;  %v224_v54 = vld [vmem:[%s4358_s2 + $0x640] sm:$0xff] }
  0xc4   :  { %875 = vmatprep.mubr.f32.mxu0 %v124_v56  ;;  %2550 = vmatprep.mubr.msk.f32.mxu1 %vm351_vm0, %v134_v57  ;;  %v168_v55 = vld [vmem:[%s4358_s2 + $0x480] sm:$0xff]  ;;  %v227_v56 = vld [vmem:[%s4358_s2 + $0x658] sm:$0xff] }
  0xc5   :  { %v172_v57 = vld [vmem:[%s4358_s2 + $0x4a0] sm:$0xff] }
  0xc7   :  { %876 = vmatmul.mubr.f32.gmra.mrb[66].mxu0 %v123_v58  ;;  %2551 = vmatmul.mubr.msk.f32.gmra.mrb[66].mxu1 %vm351_vm0, %v137_v59  ;;  %v230_v58 = vld [vmem:[%s4358_s2 + $0x670] sm:$0xff]  ;;  %v171_v59 = vld [vmem:[%s4358_s2 + $0x498] sm:$0xff] }
  0xc8   :  { %880 = vmatprep.mubr.f32.mxu0 %v127_v60  ;;  %2553 = vmatprep.mubr.msk.f32.mxu1 %vm351_vm0, %v140_v61  ;;  %v233_v60 = vld [vmem:[%s4358_s2 + $0x688] sm:$0xff]  ;;  %v175_v61 = vld [vmem:[%s4358_s2 + $0x4b8] sm:$0xff] }
  0xcb   :  { %881 = vmatmul.mubr.f32.gmra.mrb[68].mxu0 %v126_v62  ;;  %2554 = vmatmul.mubr.msk.f32.gmra.mrb[68].mxu1 %vm351_vm0, %v143_v63  ;;  %v236_v62 = vld [vmem:[%s4358_s2 + $0x6a0] sm:$0xff]  ;;  %v174_v63 = vld [vmem:[%s4358_s2 + $0x4b0] sm:$0xff] }
  0xcc   :  { %885 = vmatprep.mubr.f32.mxu0 %v130_v0  ;;  %2556 = vmatprep.mubr.msk.f32.mxu1 %vm351_vm0, %v146_v1  ;;  %v239_v0 = vld [vmem:[%s4358_s2 + $0x6b8] sm:$0xff]  ;;  %v178_v1 = vld [vmem:[%s4358_s2 + $0x4d0] sm:$0xff] }
  0xcf   :  { %886 = vmatmul.mubr.f32.gmra.mrb[70].mxu0 %v129_v2  ;;  %2557 = vmatmul.mubr.msk.f32.gmra.mrb[70].mxu1 %vm351_vm0, %v149_v4  ;;  %v242_v2 = vld [vmem:[%s4358_s2 + $0x6d0] sm:$0xff]  ;;  %v177_v4 = vld [vmem:[%s4358_s2 + $0x4c8] sm:$0xff] }
  0xd0   :  { %890 = vmatprep.mubr.f32.mxu0 %v133_v5  ;;  %2559 = vmatprep.mubr.msk.f32.mxu1 %vm351_vm0, %v152_v6  ;;  %v245_v5 = vld [vmem:[%s4358_s2 + $0x6e8] sm:$0xff] }
  0xd1   :  { %v181_v6 = vld [vmem:[%s4358_s2 + $0x4e8] sm:$0xff] }
  0xd3   :  { %891 = vmatmul.mubr.f32.gmra.mrb[72].mxu0 %v132_v7  ;;  %2560 = vmatmul.mubr.msk.f32.gmra.mrb[72].mxu1 %vm351_vm0, %v155_v8  ;;  %v248_v7 = vld [vmem:[%s4358_s2 + $0x700] sm:$0xff] }
  0xd4   :  { %895 = vmatprep.mubr.f32.mxu0 %v136_v9  ;;  %2562 = vmatprep.mubr.msk.f32.mxu1 %vm351_vm0, %v158_v10  ;;  %v180_v8 = vld [vmem:[%s4358_s2 + $0x4e0] sm:$0xff]  ;;  %v251_v9 = vld [vmem:[%s4358_s2 + $0x718] sm:$0xff] }
  0xd5   :  { %v184_v10 = vld [vmem:[%s4358_s2 + $0x500] sm:$0xff] }
  0xd7   :  { %896 = vmatmul.mubr.f32.gmra.mrb[74].mxu0 %v135_v11  ;;  %2563 = vmatmul.mubr.msk.f32.gmra.mrb[74].mxu1 %vm351_vm0, %v161_v12  ;;  %v254_v11 = vld [vmem:[%s4358_s2 + $0x730] sm:$0xff]  ;;  %v183_v12 = vld [vmem:[%s4358_s2 + $0x4f8] sm:$0xff] }
  0xd8   :  { %900 = vmatprep.mubr.f32.mxu0 %v139_v13  ;;  %2565 = vmatprep.mubr.msk.f32.mxu1 %vm351_vm0, %v164_v14  ;;  %v257_v13 = vld [vmem:[%s4358_s2 + $0x748] sm:$0xff]  ;;  %v187_v14 = vld [vmem:[%s4358_s2 + $0x518] sm:$0xff] }
  0xdb   :  { %901 = vmatmul.mubr.f32.gmra.mrb[76].mxu0 %v138_v15  ;;  %2566 = vmatmul.mubr.msk.f32.gmra.mrb[76].mxu1 %vm351_vm0, %v167_v16  ;;  %v260_v15 = vld [vmem:[%s4358_s2 + $0x760] sm:$0xff] }
  0xdc   :  { %905 = vmatprep.mubr.f32.mxu0 %v142_v17  ;;  %2568 = vmatprep.mubr.msk.f32.mxu1 %vm351_vm0, %v170_v18 }
  0xdf   :  { %906 = vmatmul.mubr.f32.gmra.mrb[78].mxu0 %v141_v19  ;;  %2569 = vmatmul.mubr.msk.f32.gmra.mrb[78].mxu1 %vm351_vm0, %v173_v20  ;;  %v186_v20 = vld [vmem:[%s4358_s2 + $0x510] sm:$0xff] }
  0xe0   :  { %910 = vmatprep.mubr.f32.mxu0 %v145_v21  ;;  %2571 = vmatprep.mubr.msk.f32.mxu1 %vm351_vm0, %v176_v22  ;;  %v263_v21 = vld [vmem:[%s4358_s2 + $0x778] sm:$0xff]  ;;  %v190_v22 = vld [vmem:[%s4358_s2 + $0x530] sm:$0xff] }
  0xe3   :  { %911 = vmatmul.mubr.f32.gmra.mrb[80].mxu0 %v144_v23  ;;  %2572 = vmatmul.mubr.msk.f32.gmra.mrb[80].mxu1 %vm351_vm0, %v179_v24  ;;  %v266_v23 = vld [vmem:[%s4358_s2 + $0x790] sm:$0xff] }
  0xe4   :  { %915 = vmatprep.mubr.f32.mxu0 %v148_v25  ;;  %2574 = vmatprep.mubr.msk.f32.mxu1 %vm351_vm0, %v182_v26 }
  0xe7   :  { %916 = vmatmul.mubr.f32.gmra.mrb[82].mxu0 %v147_v27  ;;  %2575 = vmatmul.mubr.msk.f32.gmra.mrb[82].mxu1 %vm351_vm0, %v185_v28  ;;  %v189_v28 = vld [vmem:[%s4358_s2 + $0x528] sm:$0xff] }
  0xe8   :  { %920 = vmatprep.mubr.f32.mxu0 %v151_v29  ;;  %2577 = vmatprep.mubr.msk.f32.mxu1 %vm351_vm0, %v188_v30  ;;  %v269_v29 = vld [vmem:[%s4358_s2 + $0x7a8] sm:$0xff] }
  0xe9   :  { %v193_v30 = vld [vmem:[%s4358_s2 + $0x548] sm:$0xff] }
  0xeb   :  { %921 = vmatmul.mubr.f32.gmra.mrb[84].mxu0 %v150_v31  ;;  %2578 = vmatmul.mubr.msk.f32.gmra.mrb[84].mxu1 %vm351_vm0, %v191_v32  ;;  %v272_v31 = vld [vmem:[%s4358_s2 + $0x7c0] sm:$0xff] }
  0xec   :  { %925 = vmatprep.mubr.f32.mxu0 %v154_v33  ;;  %2580 = vmatprep.mubr.msk.f32.mxu1 %vm351_vm0, %v194_v34 }
  0xef   :  { %926 = vmatmul.mubr.f32.gmra.mrb[86].mxu0 %v153_v35  ;;  %2581 = vmatmul.mubr.msk.f32.gmra.mrb[86].mxu1 %vm351_vm0, %v197_v36  ;;  %v192_v36 = vld [vmem:[%s4358_s2 + $0x540] sm:$0xff] }
  0xf0   :  { %930 = vmatprep.mubr.f32.mxu0 %v157_v37  ;;  %2583 = vmatprep.mubr.msk.f32.mxu1 %vm351_vm0, %v200_v38  ;;  %v275_v37 = vld [vmem:[%s4358_s2 + $0x7d8] sm:$0xff]  ;;  %v196_v38 = vld [vmem:[%s4358_s2 + $0x560] sm:$0xff] }
  0xf3   :  { %931 = vmatmul.mubr.f32.gmra.mrb[88].mxu0 %v156_v39  ;;  %2584 = vmatmul.mubr.msk.f32.gmra.mrb[88].mxu1 %vm351_vm0, %v203_v40  ;;  %v278_v39 = vld [vmem:[%s4358_s2 + $0x7f0] sm:$0xff] }
  0xf4   :  { %935 = vmatprep.mubr.f32.mxu0 %v160_v41  ;;  %2586 = vmatprep.mubr.msk.f32.mxu1 %vm351_vm0, %v206_v42 }
  0xf7   :  { %936 = vmatmul.mubr.f32.gmra.mrb[90].mxu0 %v159_v43  ;;  %2587 = vmatmul.mubr.msk.f32.gmra.mrb[90].mxu1 %vm351_vm0, %v209_v44  ;;  %v195_v44 = vld [vmem:[%s4358_s2 + $0x558] sm:$0xff] }
  0xf8   :  { %940 = vmatprep.mubr.f32.mxu0 %v163_v45  ;;  %2589 = vmatprep.mubr.msk.f32.mxu1 %vm351_vm0, %v212_v46  ;;  %v281_v45 = vld [vmem:[%s4358_s2 + $0x808] sm:$0xff]  ;;  %v199_v46 = vld [vmem:[%s4358_s2 + $0x578] sm:$0xff] }
  0xfb   :  { %941 = vmatmul.mubr.f32.gmra.mrb[92].mxu0 %v162_v47  ;;  %2590 = vmatmul.mubr.msk.f32.gmra.mrb[92].mxu1 %vm351_vm0, %v215_v48  ;;  %v284_v47 = vld [vmem:[%s4358_s2 + $0x820] sm:$0xff] }
  0xfc   :  { %945 = vmatprep.mubr.f32.mxu0 %v166_v49  ;;  %2592 = vmatprep.mubr.msk.f32.mxu1 %vm351_vm0, %v218_v50 }
  0xff   :  { %946 = vmatmul.mubr.f32.gmra.mrb[94].mxu0 %v165_v51  ;;  %2593 = vmatmul.mubr.msk.f32.gmra.mrb[94].mxu1 %vm351_vm0, %v221_v52  ;;  %v198_v52 = vld [vmem:[%s4358_s2 + $0x570] sm:$0xff] }
 0x100   :  { %950 = vmatprep.mubr.f32.mxu0 %v169_v53  ;;  %2595 = vmatprep.mubr.msk.f32.mxu1 %vm351_vm0, %v224_v54  ;;  %v287_v53 = vld [vmem:[%s4358_s2 + $0x838] sm:$0xff]  ;;  %v202_v54 = vld [vmem:[%s4358_s2 + $0x590] sm:$0xff] }
 0x103   :  { %951 = vmatmul.mubr.f32.gmra.mrb[96].mxu0 %v168_v55  ;;  %2596 = vmatmul.mubr.msk.f32.gmra.mrb[96].mxu1 %vm351_vm0, %v227_v56  ;;  %v290_v55 = vld [vmem:[%s4358_s2 + $0x850] sm:$0xff] }
 0x104   :  { %955 = vmatprep.mubr.f32.mxu0 %v172_v57  ;;  %2598 = vmatprep.mubr.msk.f32.mxu1 %vm351_vm0, %v230_v58 }
 0x107   :  { %956 = vmatmul.mubr.f32.gmra.mrb[98].mxu0 %v171_v59  ;;  %2599 = vmatmul.mubr.msk.f32.gmra.mrb[98].mxu1 %vm351_vm0, %v233_v60  ;;  %v201_v60 = vld [vmem:[%s4358_s2 + $0x588] sm:$0xff] }
 0x108   :  { %960 = vmatprep.mubr.f32.mxu0 %v175_v61  ;;  %2601 = vmatprep.mubr.msk.f32.mxu1 %vm351_vm0, %v236_v62  ;;  %v293_v61 = vld [vmem:[%s4358_s2 + $0x868] sm:$0xff] }
 0x109   :  { %v205_v62 = vld [vmem:[%s4358_s2 + $0x5a8] sm:$0xff] }
 0x10b   :  { %961 = vmatmul.mubr.f32.gmra.mrb[100].mxu0 %v174_v63  ;;  %2602 = vmatmul.mubr.msk.f32.gmra.mrb[100].mxu1 %vm351_vm0, %v239_v0  ;;  %v296_v63 = vld [vmem:[%s4358_s2 + $0x880] sm:$0xff] }
 0x10c   :  { %965 = vmatprep.mubr.f32.mxu0 %v178_v1  ;;  %2604 = vmatprep.mubr.msk.f32.mxu1 %vm351_vm0, %v242_v2 }
 0x10f   :  { %966 = vmatmul.mubr.f32.gmra.mrb[102].mxu0 %v177_v4  ;;  %2605 = vmatmul.mubr.msk.f32.gmra.mrb[102].mxu1 %vm351_vm0, %v245_v5  ;;  %v204_v5 = vld [vmem:[%s4358_s2 + $0x5a0] sm:$0xff] }
 0x110   :  { %970 = vmatprep.mubr.f32.mxu0 %v181_v6  ;;  %2607 = vmatprep.mubr.msk.f32.mxu1 %vm351_vm0, %v248_v7  ;;  %v299_v6 = vld [vmem:[%s4358_s2 + $0x898] sm:$0xff]  ;;  %v208_v7 = vld [vmem:[%s4358_s2 + $0x5c0] sm:$0xff] }
 0x113   :  { %971 = vmatmul.mubr.f32.gmra.mrb[104].mxu0 %v180_v8  ;;  %2608 = vmatmul.mubr.msk.f32.gmra.mrb[104].mxu1 %vm351_vm0, %v251_v9  ;;  %v302_v8 = vld [vmem:[%s4358_s2 + $0x8b0] sm:$0xff] }
 0x114   :  { %975 = vmatprep.mubr.f32.mxu0 %v184_v10  ;;  %2610 = vmatprep.mubr.msk.f32.mxu1 %vm351_vm0, %v254_v11 }
 0x116   :  { %v3764_v16 = vpop.f32.mrb[0].mxu0  ;;  %v3766_v17 = vpop.f32.mrb[0].mxu1 }
 0x117   :  { %v714_v18 = vpop.f32.mrb[1].mxu0  ;;  %976 = vmatmul.mubr.f32.gmra.mrb[106].mxu0 %v183_v12  ;;  %2611 = vmatmul.mubr.msk.f32.gmra.mrb[106].mxu1 %vm351_vm0, %v257_v13  ;;  %v1129_v19 = vpop.f32.mrb[1].mxu1  ;;  %v207_v13 = vld [vmem:[%s4358_s2 + $0x5b8] sm:$0xff] }
 0x118   :  { %980 = vmatprep.mubr.f32.mxu0 %v187_v14  ;;  %2613 = vmatprep.mubr.msk.f32.mxu1 %vm351_vm0, %v260_v15  ;;  %v305_v14 = vld [vmem:[%s4358_s2 + $0x8c8] sm:$0xff]  ;;  %v211_v15 = vld [vmem:[%s4358_s2 + $0x5d8] sm:$0xff]  ;;  %v308_v18 = vld [vmem:[%s4358_s2 + $0x8e0] sm:$0xff] }
 0x11a   :  { %v3782_v24 = vpop.f32.mrb[2].mxu0  ;;  %v3784_v25 = vpop.f32.mrb[2].mxu1 }
 0x11b   :  { %v719_v26 = vpop.f32.mrb[3].mxu0  ;;  %981 = vmatmul.mubr.f32.gmra.mrb[108].mxu0 %v186_v20  ;;  %2614 = vmatmul.mubr.msk.f32.gmra.mrb[108].mxu1 %vm351_vm0, %v263_v21  ;;  %v1134_v27 = vpop.f32.mrb[3].mxu1 }
 0x11c   :  { %985 = vmatprep.mubr.f32.mxu0 %v190_v22  ;;  %2616 = vmatprep.mubr.msk.f32.mxu1 %vm351_vm0, %v266_v23  ;;  %v210_v23 = vld [vmem:[%s4358_s2 + $0x5d0] sm:$0xff]  ;;  %v311_v26 = vld [vmem:[%s4358_s2 + $0x8f8] sm:$0xff] }
 0x11d   :  { %v214_v27 = vld [vmem:[%s4358_s2 + $0x5f0] sm:$0xff] }
 0x11e   :  { %v3800_v32 = vpop.f32.mrb[4].mxu0  ;;  %v3802_v33 = vpop.f32.mrb[4].mxu1 }
 0x11f   :  { %v724_v34 = vpop.f32.mrb[5].mxu0  ;;  %986 = vmatmul.mubr.f32.gmra.mrb[110].mxu0 %v189_v28  ;;  %2617 = vmatmul.mubr.msk.f32.gmra.mrb[110].mxu1 %vm351_vm0, %v269_v29  ;;  %v1139_v35 = vpop.f32.mrb[5].mxu1  ;;  %v314_v28 = vld [vmem:[%s4358_s2 + $0x910] sm:$0xff] }
 0x120   :  { %990 = vmatprep.mubr.f32.mxu0 %v193_v30  ;;  %2619 = vmatprep.mubr.msk.f32.mxu1 %vm351_vm0, %v272_v31  ;;  %v213_v35 = vld [vmem:[%s4358_s2 + $0x5e8] sm:$0xff] }
 0x122   :  { %v3818_v40 = vpop.f32.mrb[6].mxu0  ;;  %v3820_v41 = vpop.f32.mrb[6].mxu1 }
 0x123   :  { %v729_v42 = vpop.f32.mrb[7].mxu0  ;;  %991 = vmatmul.mubr.f32.gmra.mrb[112].mxu0 %v192_v36  ;;  %2620 = vmatmul.mubr.msk.f32.gmra.mrb[112].mxu1 %vm351_vm0, %v275_v37  ;;  %v1144_v43 = vpop.f32.mrb[7].mxu1  ;;  %v317_v36 = vld [vmem:[%s4358_s2 + $0x928] sm:$0xff] }
 0x124   :  { %995 = vmatprep.mubr.f32.mxu0 %v196_v38  ;;  %2622 = vmatprep.mubr.msk.f32.mxu1 %vm351_vm0, %v278_v39  ;;  %v217_v37 = vld [vmem:[%s4358_s2 + $0x608] sm:$0xff] }
 0x126   :  { %v3836_v48 = vpop.f32.mrb[8].mxu0  ;;  %v3838_v49 = vpop.f32.mrb[8].mxu1 }
 0x127   :  { %v734_v50 = vpop.f32.mrb[9].mxu0  ;;  %996 = vmatmul.mubr.f32.gmra.mrb[114].mxu0 %v195_v44  ;;  %2623 = vmatmul.mubr.msk.f32.gmra.mrb[114].mxu1 %vm351_vm0, %v281_v45  ;;  %v1149_v51 = vpop.f32.mrb[9].mxu1  ;;  %v216_v44 = vld [vmem:[%s4358_s2 + $0x600] sm:$0xff] }
 0x128   :  { %1000 = vmatprep.mubr.f32.mxu0 %v199_v46  ;;  %2625 = vmatprep.mubr.msk.f32.mxu1 %vm351_vm0, %v284_v47  ;;  %v220_v45 = vld [vmem:[%s4358_s2 + $0x620] sm:$0xff] }
 0x12a   :  { %v3854_v56 = vpop.f32.mrb[10].mxu0  ;;  %v3856_v57 = vpop.f32.mrb[10].mxu1 }
 0x12b   :  { %v739_v58 = vpop.f32.mrb[11].mxu0  ;;  %1001 = vmatmul.mubr.f32.gmra.mrb[116].mxu0 %v198_v52  ;;  %2626 = vmatmul.mubr.msk.f32.gmra.mrb[116].mxu1 %vm351_vm0, %v287_v53  ;;  %v1154_v59 = vpop.f32.mrb[11].mxu1  ;;  %v219_v52 = vld [vmem:[%s4358_s2 + $0x618] sm:$0xff] }
 0x12c   :  { %1005 = vmatprep.mubr.f32.mxu0 %v202_v54  ;;  %2628 = vmatprep.mubr.msk.f32.mxu1 %vm351_vm0, %v290_v55  ;;  %v223_v53 = vld [vmem:[%s4358_s2 + $0x638] sm:$0xff] }
 0x12e   :  { %v3872_v0 = vpop.f32.mrb[12].mxu0  ;;  %v3874_v1 = vpop.f32.mrb[12].mxu1 }
 0x12f   :  { %v744_v2 = vpop.f32.mrb[13].mxu0  ;;  %1006 = vmatmul.mubr.f32.gmra.mrb[118].mxu0 %v201_v60  ;;  %2629 = vmatmul.mubr.msk.f32.gmra.mrb[118].mxu1 %vm351_vm0, %v293_v61  ;;  %v1159_v4 = vpop.f32.mrb[13].mxu1  ;;  %v222_v60 = vld [vmem:[%s4358_s2 + $0x630] sm:$0xff] }
 0x130   :  { %1010 = vmatprep.mubr.f32.mxu0 %v205_v62  ;;  %2631 = vmatprep.mubr.msk.f32.mxu1 %vm351_vm0, %v296_v63  ;;  %v226_v61 = vld [vmem:[%s4358_s2 + $0x650] sm:$0xff] }
 0x132   :  { %v3890_v9 = vpop.f32.mrb[14].mxu0  ;;  %v3892_v10 = vpop.f32.mrb[14].mxu1 }
 0x133   :  { %v749_v11 = vpop.f32.mrb[15].mxu0  ;;  %1011 = vmatmul.mubr.f32.gmra.mrb[120].mxu0 %v204_v5  ;;  %2632 = vmatmul.mubr.msk.f32.gmra.mrb[120].mxu1 %vm351_vm0, %v299_v6  ;;  %v1164_v12 = vpop.f32.mrb[15].mxu1  ;;  %v225_v5 = vld [vmem:[%s4358_s2 + $0x648] sm:$0xff] }
 0x134   :  { %1015 = vmatprep.mubr.f32.mxu0 %v208_v7  ;;  %2634 = vmatprep.mubr.msk.f32.mxu1 %vm351_vm0, %v302_v8  ;;  %v229_v6 = vld [vmem:[%s4358_s2 + $0x668] sm:$0xff] }
 0x136   :  { %v3908_v19 = vpop.f32.mrb[16].mxu0  ;;  %v3910_v20 = vpop.f32.mrb[16].mxu1 }
 0x137   :  { %v754_v21 = vpop.f32.mrb[17].mxu0  ;;  %1016 = vmatmul.mubr.f32.gmra.mrb[122].mxu0 %v207_v13  ;;  %2635 = vmatmul.mubr.msk.f32.gmra.mrb[122].mxu1 %vm351_vm0, %v305_v14  ;;  %v1169_v22 = vpop.f32.mrb[17].mxu1  ;;  %v228_v13 = vld [vmem:[%s4358_s2 + $0x660] sm:$0xff] }
 0x138   :  { %1020 = vmatprep.mubr.f32.mxu0 %v211_v15  ;;  %2637 = vmatprep.mubr.msk.f32.mxu1 %vm351_vm0, %v308_v18  ;;  %v232_v14 = vld [vmem:[%s4358_s2 + $0x680] sm:$0xff] }
 0x13a   :  { %v3926_v29 = vpop.f32.mrb[18].mxu0  ;;  %v3928_v30 = vpop.f32.mrb[18].mxu1 }
 0x13b   :  { %v759_v31 = vpop.f32.mrb[19].mxu0  ;;  %1021 = vmatmul.mubr.f32.gmra.mrb[124].mxu0 %v210_v23  ;;  %2638 = vmatmul.mubr.msk.f32.gmra.mrb[124].mxu1 %vm351_vm0, %v311_v26  ;;  %v1174_v34 = vpop.f32.mrb[19].mxu1 }
 0x13c   :  { %1025 = vmatprep.mubr.f32.mxu0 %v214_v27  ;;  %2640 = vmatprep.mubr.msk.f32.mxu1 %vm351_vm0, %v314_v28  ;;  %v231_v27 = vld [vmem:[%s4358_s2 + $0x678] sm:$0xff] }
 0x13d   :  { %v235_v31 = vld [vmem:[%s4358_s2 + $0x698] sm:$0xff] }
 0x13e   :  { %v3941_v38 = vpop.f32.mrb[20].mxu0  ;;  %v3943_v39 = vpop.f32.mrb[20].mxu1 }
 0x13f   :  { %v764_v42 = vpop.f32.mrb[21].mxu0  ;;  %1026 = vmatmul.mubr.f32.gmra.mrb[126].mxu0 %v213_v35  ;;  %2641 = vmatmul.mubr.msk.f32.gmra.mrb[126].mxu1 %vm351_vm0, %v317_v36  ;;  %v1179_v43 = vpop.f32.mrb[21].mxu1 }
 0x140   :  { %1030 = vmatprep.mubr.f32.mxu0 %v217_v37 }
 0x142   :  { %v3952_v46 = vpop.f32.mrb[22].mxu0  ;;  %v3954_v47 = vpop.f32.mrb[22].mxu1 }
 0x143   :  { %v769_v50 = vpop.f32.mrb[23].mxu0  ;;  %1031 = vmatmul.mubr.f32.gmra.mrb[128].mxu0 %v216_v44  ;;  %v1184_v51 = vpop.f32.mrb[23].mxu1  ;;  %v234_v44 = vld [vmem:[%s4358_s2 + $0x690] sm:$0xff] }
 0x144   :  { %1035 = vmatprep.mubr.f32.mxu0 %v220_v45  ;;  %v238_v50 = vld [vmem:[%s4358_s2 + $0x6b0] sm:$0xff] }
 0x146   :  { %v3962_v54 = vpop.f32.mrb[24].mxu0  ;;  %v3964_v55 = vpop.f32.mrb[24].mxu1 }
 0x147   :  { %v774_v58 = vpop.f32.mrb[25].mxu0  ;;  %1036 = vmatmul.mubr.f32.gmra.mrb[130].mxu0 %v219_v52  ;;  %v1189_v59 = vpop.f32.mrb[25].mxu1 }
 0x148   :  { %1040 = vmatprep.mubr.f32.mxu0 %v223_v53 }
 0x14a   :  { %v3972_v62 = vpop.f32.mrb[26].mxu0  ;;  %v3974_v63 = vpop.f32.mrb[26].mxu1 }
 0x14b   :  { %v779_v2 = vpop.f32.mrb[27].mxu0  ;;  %1041 = vmatmul.mubr.f32.gmra.mrb[132].mxu0 %v222_v60  ;;  %v1194_v4 = vpop.f32.mrb[27].mxu1 }
 0x14c   :  { %1045 = vmatprep.mubr.f32.mxu0 %v226_v61  ;;  %v237_v61 = vld [vmem:[%s4358_s2 + $0x6a8] sm:$0xff] }
 0x14d   :  { %v241_v4 = vld [vmem:[%s4358_s2 + $0x6c8] sm:$0xff] }
 0x14e   :  { %v3982_v7 = vpop.f32.mrb[28].mxu0  ;;  %v3984_v8 = vpop.f32.mrb[28].mxu1 }
 0x14f   :  { %v784_v11 = vpop.f32.mrb[29].mxu0  ;;  %1046 = vmatmul.mubr.f32.gmra.mrb[134].mxu0 %v225_v5  ;;  %v1199_v12 = vpop.f32.mrb[29].mxu1 }
 0x150   :  { %1050 = vmatprep.mubr.f32.mxu0 %v229_v6  ;;  %v4031_v11 = vld [vmem:[%s4359_s3] sm:$0xff] }
 0x152   :  { %v3992_v15 = vpop.f32.mrb[30].mxu0  ;;  %v2498_v18 = vpop.f32.mrb[30].mxu1 }
 0x153   :  { %v1273_v21 = vadd.f32 %v2498_v18, %v3782_v24  ;;  %v789_v22 = vpop.f32.mrb[31].mxu0  ;;  %1051 = vmatmul.mubr.f32.gmra.mrb[136].mxu0 %v228_v13  ;;  %v1267_v23 = vpop.f32.mrb[31].mxu1 }
 0x154   :  { %v1268_v26 = vadd.f32 %v1267_v23, %v3764_v16  ;;  %1055 = vmatprep.mubr.f32.mxu0 %v232_v14  ;;  %v1876_v14 = vcombine.high %v4031_v11, %v4031_v11  ;;  %v240_v22 = vld [vmem:[%s4358_s2 + $0x6c0] sm:$0xff] }
 0x155   :  { %v1757_v28 = vmax.f32 %v1273_v21, 0.0 }
 0x156   :  { %v1756_v34 = vmax.f32 %v1268_v26, 0.0  ;;  %v4002_v35 = vpop.f32.mrb[32].mxu0  ;;  %v2501_v36 = vpop.f32.mrb[32].mxu1  ;;  %1949 = vmatprep.mubr.f32.mxu1 %v1876_v14  ;;  %v253_v14 = vld [vmem:[%s4358_s2 + $0x728] sm:$0xff] }
 0x157   :  { %v1283_v24 = vadd.f32 %v2501_v36, %v3818_v40  ;;  %v794_v37 = vpop.f32.mrb[33].mxu0  ;;  %1056 = vmatmul.mubr.f32.gmra.mrb[138].mxu0 %v231_v27  ;;  %v1277_v42 = vpop.f32.mrb[33].mxu1 }
 0x158   :  { %v4005_v16 = vpack.c.bf16 %v1757_v28, %v1756_v34  ;;  %v1278_v43 = vadd.f32 %v1277_v42, %v3800_v32  ;;  %1060 = vmatprep.mubr.f32.mxu0 %v235_v31  ;;  %v243_v37 = vld [vmem:[%s4358_s2 + $0x6d8] sm:$0xff] }
 0x159   :  { %v1759_v45 = vmax.f32 %v1283_v24, 0.0 }
 0x15a   :  { %v1758_v51 = vmax.f32 %v1278_v43, 0.0  ;;  %v4014_v52 = vpop.f32.mrb[34].mxu0  ;;  %v2504_v40 = vpop.f32.mrb[34].mxu1  ;;  %v247_v43 = vld [vmem:[%s4358_s2 + $0x6f8] sm:$0xff] }
 0x15b   :  { %v1293_v53 = vadd.f32 %v2504_v40, %v3854_v56  ;;  %v799_v58 = vpop.f32.mrb[35].mxu0  ;;  %1061 = vmatmul.mubr.f32.gmra.mrb[140].mxu0 %v234_v44  ;;  %v1287_v59 = vpop.f32.mrb[35].mxu1 }
 0x15c   :  { %v4017_v32 = vpack.c.bf16 %v1759_v45, %v1758_v51  ;;  %v1288_v60 = vadd.f32 %v1287_v59, %v3836_v48  ;;  %1065 = vmatprep.mubr.f32.mxu0 %v238_v50  ;;  %v246_v58 = vld [vmem:[%s4358_s2 + $0x6f0] sm:$0xff] }
 0x15d   :  { %v1761_v2 = vmax.f32 %v1293_v53, 0.0 }
 0x15e   :  { %v1760_v5 = vmax.f32 %v1288_v60, 0.0  ;;  %v4026_v6 = vpop.f32.mrb[36].mxu0  ;;  %v2507_v56 = vpop.f32.mrb[36].mxu1  ;;  %v250_v60 = vld [vmem:[%s4358_s2 + $0x710] sm:$0xff] }
 0x15f   :  { %v1303_v48 = vadd.f32 %v2507_v56, %v3890_v9  ;;  %v804_v12 = vpop.f32.mrb[37].mxu0  ;;  %1066 = vmatmul.mubr.f32.gmra.mrb[142].mxu0 %v237_v61  ;;  %v1297_v13 = vpop.f32.mrb[37].mxu1  ;;  %v244_v9 = vld [vmem:[%s4358_s2 + $0x6e0] sm:$0xff] }
 0x160   :  { %v4036_v18 = vpack.c.bf16 %v1761_v2, %v1760_v5  ;;  %v1298_v21 = vadd.f32 %v1297_v13, %v3872_v0  ;;  %1070 = vmatprep.mubr.f32.mxu0 %v241_v4  ;;  %v249_v12 = vld [vmem:[%s4358_s2 + $0x708] sm:$0xff] }
 0x161   :  { %v1763_v23 = vmax.f32 %v1303_v48, 0.0 }
 0x162   :  { %v1762_v26 = vmax.f32 %v1298_v21, 0.0  ;;  %v4045_v27 = vpop.f32.mrb[38].mxu0  ;;  %v2510_v28 = vpop.f32.mrb[38].mxu1 }
 0x163   :  { %v1313_v31 = vadd.f32 %v2510_v28, %v3926_v29  ;;  %v809_v34 = vpop.f32.mrb[39].mxu0  ;;  %1071 = vmatmul.mubr.f32.gmra.mrb[144].mxu0 %v240_v22  ;;  %v1307_v0 = vpop.f32.mrb[39].mxu1 }
 0x164   :  { %v4048_v36 = vpack.c.bf16 %v1763_v23, %v1762_v26  ;;  %v1308_v24 = vadd.f32 %v1307_v0, %v3908_v19  ;;  %1075 = vmatprep.mubr.f32.mxu0 %v244_v9  ;;  %v256_v0 = vld [vmem:[%s4358_s2 + $0x740] sm:$0xff] }
 0x165   :  { %v1765_v42 = vmax.f32 %v1313_v31, 0.0  ;;  %v252_v31 = vld [vmem:[%s4358_s2 + $0x720] sm:$0xff] }
 0x166   :  { %v1764_v44 = vmax.f32 %v1308_v24, 0.0  ;;  %v4057_v45 = vpop.f32.mrb[40].mxu0  ;;  %v2513_v29 = vpop.f32.mrb[40].mxu1 }
 0x167   :  { %v1323_v50 = vadd.f32 %v2513_v29, %v3952_v46  ;;  %v814_v51 = vpop.f32.mrb[41].mxu0  ;;  %1076 = vmatmul.mubr.f32.gmra.mrb[146].mxu0 %v243_v37  ;;  %v1317_v40 = vpop.f32.mrb[41].mxu1 }
 0x168   :  { %v4060_v19 = vpack.c.bf16 %v1765_v42, %v1764_v44  ;;  %v1318_v53 = vadd.f32 %v1317_v40, %v3941_v38  ;;  %1080 = vmatprep.mubr.f32.mxu0 %v247_v43  ;;  %v259_v40 = vld [vmem:[%s4358_s2 + $0x758] sm:$0xff] }
 0x169   :  { %v1767_v59 = vmax.f32 %v1323_v50, 0.0  ;;  %v255_v50 = vld [vmem:[%s4358_s2 + $0x738] sm:$0xff] }
 0x16a   :  { %v1766_v61 = vmax.f32 %v1318_v53, 0.0  ;;  %v817_v2 = vpop.f32.mrb[42].mxu0  ;;  %v2516_v46 = vpop.f32.mrb[42].mxu1 }
 0x16b   :  { %v1333_v4 = vadd.f32 %v2516_v46, %v3972_v62  ;;  %v819_v5 = vpop.f32.mrb[43].mxu0  ;;  %1081 = vmatmul.mubr.f32.gmra.mrb[148].mxu0 %v246_v58  ;;  %v1327_v56 = vpop.f32.mrb[43].mxu1 }
 0x16c   :  { %v4070_v48 = vpack.c.bf16 %v1767_v59, %v1766_v61  ;;  %v1328_v38 = vadd.f32 %v1327_v56, %v3962_v54  ;;  %1085 = vmatprep.mubr.f32.mxu0 %v250_v60  ;;  %v262_v56 = vld [vmem:[%s4358_s2 + $0x770] sm:$0xff] }
 0x16d   :  { %v1769_v13 = vmax.f32 %v1333_v4, 0.0  ;;  %v258_v4 = vld [vmem:[%s4358_s2 + $0x750] sm:$0xff] }
 0x16e   :  { %v1768_v21 = vmax.f32 %v1328_v38, 0.0  ;;  %v4079_v22 = vpop.f32.mrb[44].mxu0  ;;  %v2519_v62 = vpop.f32.mrb[44].mxu1 }
 0x16f   :  { %v1343_v23 = vadd.f32 %v2519_v62, %v3992_v15  ;;  %v824_v9 = vpop.f32.mrb[45].mxu0  ;;  %1086 = vmatmul.mubr.f32.gmra.mrb[150].mxu0 %v249_v12  ;;  %v1337_v26 = vpop.f32.mrb[45].mxu1 }
 0x170   :  { %v4082_v54 = vpack.c.bf16 %v1769_v13, %v1768_v21  ;;  %v1338_v28 = vadd.f32 %v1337_v26, %v3982_v7  ;;  %1090 = vmatprep.mubr.f32.mxu0 %v253_v14  ;;  %v265_v26 = vld [vmem:[%s4358_s2 + $0x788] sm:$0xff] }
 0x171   :  { %v1771_v34 = vmax.f32 %v1343_v23, 0.0  ;;  %v261_v23 = vld [vmem:[%s4358_s2 + $0x768] sm:$0xff] }
 0x172   :  { %v1770_v24 = vmax.f32 %v1338_v28, 0.0  ;;  %v827_v37 = vpop.f32.mrb[46].mxu0  ;;  %v2522_v15 = vpop.f32.mrb[46].mxu1 }
 0x173   :  { %v1353_v42 = vadd.f32 %v2522_v15, %v4014_v52  ;;  %v829_v43 = vpop.f32.mrb[47].mxu0  ;;  %1091 = vmatmul.mubr.f32.gmra.mrb[152].mxu0 %v252_v31  ;;  %v1347_v44 = vpop.f32.mrb[47].mxu1  ;;  %v264_v15 = vld [vmem:[%s4358_s2 + $0x780] sm:$0xff] }
 0x174   :  { %v4092_v29 = vpack.c.bf16 %v1771_v34, %v1770_v24  ;;  %v1348_v7 = vadd.f32 %v1347_v44, %v4002_v35  ;;  %1095 = vmatprep.mubr.f32.mxu0 %v256_v0  ;;  %v268_v43 = vld [vmem:[%s4358_s2 + $0x7a0] sm:$0xff] }
 0x175   :  { %v1773_v51 = vmax.f32 %v1353_v42, 0.0 }
 0x176   :  { %v1772_v53 = vmax.f32 %v1348_v7, 0.0  ;;  %v832_v58 = vpop.f32.mrb[48].mxu0  ;;  %v2525_v52 = vpop.f32.mrb[48].mxu1 }
 0x177   :  { %v1363_v59 = vadd.f32 %v2525_v52, %v4045_v27  ;;  %v834_v60 = vpop.f32.mrb[49].mxu0  ;;  %1096 = vmatmul.mubr.f32.gmra.mrb[154].mxu0 %v255_v50  ;;  %v1357_v61 = vpop.f32.mrb[49].mxu1 }
 0x178   :  { %v2698_v46 = vpack.c.bf16 %v1773_v51, %v1772_v53  ;;  %v1358_v35 = vadd.f32 %v1357_v61, %v4026_v6  ;;  %1100 = vmatprep.mubr.f32.mxu0 %v259_v40  ;;  %v267_v53 = vld [vmem:[%s4358_s2 + $0x798] sm:$0xff] }
 0x179   :  { %v1775_v5 = vmax.f32 %v1363_v59, 0.0  ;;  %v271_v59 = vld [vmem:[%s4358_s2 + $0x7b8] sm:$0xff] }
 0x17a   :  { %v1774_v38 = vmax.f32 %v1358_v35, 0.0  ;;  %v837_v12 = vpop.f32.mrb[50].mxu0  ;;  %v2528_v13 = vpop.f32.mrb[50].mxu1  ;;  %2699 = vmatprep.subr.bf16.mxu1 %v2698_v46 }
 0x17b   :  { %v1373_v27 = vadd.f32 %v2528_v13, %v817_v2  ;;  %v839_v14 = vpop.f32.mrb[51].mxu0  ;;  %1101 = vmatmul.mubr.f32.gmra.mrb[156].mxu0 %v258_v4  ;;  %v1367_v21 = vpop.f32.mrb[51].mxu1  ;;  %2701 = vmatpush3.bf16.msra.mxu1 %v4005_v16 }
 0x17c   :  { %v2702_v6 = vpack.c.bf16 %v1775_v5, %v1774_v38  ;;  %v1368_v62 = vadd.f32 %v1367_v21, %v4057_v45  ;;  %1105 = vmatprep.mubr.f32.mxu0 %v262_v56  ;;  %v270_v56 = vld [vmem:[%s4358_s2 + $0x7b0] sm:$0xff] }
 0x17d   :  { %v1777_v9 = vmax.f32 %v1373_v27, 0.0 }
 0x17e   :  { %v1776_v28 = vmax.f32 %v1368_v62, 0.0  ;;  %v842_v2 = vpop.f32.mrb[52].mxu0  ;;  %v2531_v31 = vpop.f32.mrb[52].mxu1  ;;  %2703 = vmatprep.subr.bf16.mxu1 %v2702_v6 }
 0x17f   :  { %v1383_v34 = vadd.f32 %v2531_v31, %v827_v37  ;;  %v844_v0 = vpop.f32.mrb[53].mxu0  ;;  %1106 = vmatmul.mubr.f32.gmra.mrb[158].mxu0 %v261_v23  ;;  %v1377_v16 = vpop.f32.mrb[53].mxu1  ;;  %2705 = vmatpush3.bf16.msra.mxu1 %v4017_v32 }
 0x180   :  { %v2706_v45 = vpack.c.bf16 %v1777_v9, %v1776_v28  ;;  %v1378_v24 = vadd.f32 %v1377_v16, %v4079_v22  ;;  %1110 = vmatprep.mubr.f32.mxu0 %v265_v26 }
 0x181   :  { %v1779_v42 = vmax.f32 %v1383_v34, 0.0 }
 0x182   :  { %v1778_v44 = vmax.f32 %v1378_v24, 0.0  ;;  %v847_v37 = vpop.f32.mrb[54].mxu0  ;;  %v2534_v7 = vpop.f32.mrb[54].mxu1  ;;  %2707 = vmatprep.subr.bf16.mxu1 %v2706_v45 }
 0x183   :  { %v1393_v50 = vadd.f32 %v2534_v7, %v837_v12  ;;  %v849_v51 = vpop.f32.mrb[55].mxu0  ;;  %1111 = vmatmul.mubr.f32.gmra.mrb[160].mxu0 %v264_v15  ;;  %v1387_v32 = vpop.f32.mrb[55].mxu1  ;;  %2709 = vmatpush3.bf16.msra.mxu1 %v4036_v18 }
 0x184   :  { %v2710_v22 = vpack.c.bf16 %v1779_v42, %v1778_v44  ;;  %v1388_v40 = vadd.f32 %v1387_v32, %v832_v58  ;;  %1115 = vmatprep.mubr.f32.mxu0 %v268_v43 }
 0x185   :  { %v1781_v52 = vmax.f32 %v1393_v50, 0.0 }
 0x186   :  { %v1780_v60 = vmax.f32 %v1388_v40, 0.0  ;;  %v852_v61 = vpop.f32.mrb[56].mxu0  ;;  %v2537_v46 = vpop.f32.mrb[56].mxu1  ;;  %2711 = vmatprep.subr.bf16.mxu1 %v2710_v22 }
 0x187   :  { %v1403_v35 = vadd.f32 %v2537_v46, %v847_v37  ;;  %v854_v4 = vpop.f32.mrb[57].mxu0  ;;  %1116 = vmatmul.mubr.f32.gmra.mrb[162].mxu0 %v267_v53  ;;  %v1397_v18 = vpop.f32.mrb[57].mxu1  ;;  %2713 = vmatpush3.bf16.msra.mxu1 %v4048_v36 }
 0x188   :  { %v2714_v58 = vpack.c.bf16 %v1781_v52, %v1780_v60  ;;  %v1398_v5 = vadd.f32 %v1397_v18, %v842_v2  ;;  %1120 = vmatprep.mubr.f32.mxu0 %v271_v59 }
 0x189   :  { %v1783_v38 = vmax.f32 %v1403_v35, 0.0 }
 0x18a   :  { %v1782_v12 = vmax.f32 %v1398_v5, 0.0  ;;  %v857_v13 = vpop.f32.mrb[58].mxu0  ;;  %v2540_v27 = vpop.f32.mrb[58].mxu1  ;;  %2715 = vmatprep.subr.bf16.mxu1 %v2714_v58 }
 0x18b   :  { %v1413_v14 = vadd.f32 %v2540_v27, %v857_v13  ;;  %v859_v21 = vpop.f32.mrb[59].mxu0  ;;  %1121 = vmatmul.mubr.f32.gmra.mrb[164].mxu0 %v270_v56  ;;  %v1407_v6 = vpop.f32.mrb[59].mxu1  ;;  %2717 = vmatpush3.bf16.msra.mxu1 %v4060_v19 }
 0x18c   :  { %v2718_v62 = vpack.c.bf16 %v1783_v38, %v1782_v12  ;;  %v1408_v36 = vadd.f32 %v1407_v6, %v852_v61 }
 0x18d   :  { %v1785_v23 = vmax.f32 %v1413_v14, 0.0 }
 0x18e   :  { %v1784_v9 = vmax.f32 %v1408_v36, 0.0  ;;  %v862_v26 = vpop.f32.mrb[60].mxu0  ;;  %v2543_v28 = vpop.f32.mrb[60].mxu1  ;;  %2719 = vmatprep.subr.bf16.mxu1 %v2718_v62 }
 0x18f   :  { %v864_v2 = vpop.f32.mrb[61].mxu0  ;;  %v1417_v31 = vpop.f32.mrb[61].mxu1  ;;  %2721 = vmatpush3.bf16.msra.mxu1 %v4070_v48 }
 0x190   :  { %v2722_v34 = vpack.c.bf16 %v1785_v23, %v1784_v9  ;;  %v1418_v0 = vadd.f32 %v1417_v31, %v862_v26 }
 0x192   :  { %v867_v16 = vpop.f32.mrb[62].mxu0  ;;  %2723 = vmatprep.subr.bf16.mxu1 %v2722_v34  ;;  %v2546_v45 = vpop.f32.mrb[62].mxu1  ;;  %v1786_v42 = vmax.f32 %v1418_v0, 0.0 }
 0x193   :  { %v1423_v24 = vadd.f32 %v2543_v28, %v867_v16  ;;  %v869_v15 = vpop.f32.mrb[63].mxu0  ;;  %2725 = vmatpush3.bf16.msra.mxu1 %v4082_v54  ;;  %v1427_v19 = vpop.f32.mrb[63].mxu1 }
 0x195   :  { %v1787_v43 = vmax.f32 %v1423_v24, 0.0 }
 0x196   :  { %v872_v44 = vpop.f32.mrb[64].mxu0  ;;  %v2549_v37 = vpop.f32.mrb[64].mxu1 }
 0x197   :  { %v2726_v7 = vpack.c.bf16 %v1787_v43, %v1786_v42  ;;  %v1428_v50 = vadd.f32 %v1427_v19, %v872_v44  ;;  %v874_v51 = vpop.f32.mrb[65].mxu0  ;;  %v1437_v32 = vpop.f32.mrb[65].mxu1 }
 0x199   :  { %2727 = vmatprep.subr.bf16.mxu1 %v2726_v7  ;;  %v1788_v59 = vmax.f32 %v1428_v50, 0.0 }
 0x19a   :  { %v877_v48 = vpop.f32.mrb[66].mxu0  ;;  %2729 = vmatpush3.bf16.msra.mxu1 %v4092_v29  ;;  %v2552_v22 = vpop.f32.mrb[66].mxu1 }
 0x19b   :  { %v1433_v40 = vadd.f32 %v2546_v45, %v877_v48  ;;  %v879_v53 = vpop.f32.mrb[67].mxu0  ;;  %v1447_v52 = vpop.f32.mrb[67].mxu1 }
 0x19d   :  { %v1789_v60 = vmax.f32 %v1433_v40, 0.0  ;;  %1950 = vmatmul.mubr.f32.vlgmr.msra.gmra.mrb[128].mxu1 %v4031_v11 }
 0x19e   :  { %v882_v54 = vpop.f32.mrb[68].mxu0  ;;  %v2555_v61 = vpop.f32.mrb[68].mxu1 }
 0x19f   :  { %v4141_v46 = vpack.c.bf16 %v1789_v60, %v1788_v59  ;;  %v1438_v35 = vadd.f32 %v1437_v32, %v882_v54  ;;  %v884_v4 = vpop.f32.mrb[69].mxu0  ;;  %v1457_v18 = vpop.f32.mrb[69].mxu1 }
 0x1a1   :  { %v1790_v12 = vmax.f32 %v1438_v35, 0.0 }
 0x1a2   :  { %v887_v58 = vpop.f32.mrb[70].mxu0  ;;  %v2558_v5 = vpop.f32.mrb[70].mxu1 }
 0x1a3   :  { %v1443_v56 = vadd.f32 %v2549_v37, %v887_v58  ;;  %v889_v38 = vpop.f32.mrb[71].mxu0  ;;  %v1467_v29 = vpop.f32.mrb[71].mxu1 }
 0x1a5   :  { %v1791_v13 = vmax.f32 %v1443_v56, 0.0 }
 0x1a6   :  { %v892_v27 = vpop.f32.mrb[72].mxu0  ;;  %v2561_v14 = vpop.f32.mrb[72].mxu1 }
 0x1a7   :  { %v4143_v21 = vpack.c.bf16 %v1791_v13, %v1790_v12  ;;  %v1448_v6 = vadd.f32 %v1447_v52, %v892_v27  ;;  %v894_v11 = vpop.f32.mrb[73].mxu0  ;;  %v1477_v62 = vpop.f32.mrb[73].mxu1  ;;  %v4168_v13 = vld [vmem:[%s4359_s3 + $0x8] sm:$0xff] }
 0x1a9   :  { %v1792_v2 = vmax.f32 %v1448_v6, 0.0 }
 0x1aa   :  { %v897_v36 = vpop.f32.mrb[74].mxu0  ;;  %v2564_v23 = vpop.f32.mrb[74].mxu1 }
 0x1ab   :  { %v1453_v9 = vadd.f32 %v2552_v22, %v897_v36  ;;  %v899_v26 = vpop.f32.mrb[75].mxu0  ;;  %v1487_v28 = vpop.f32.mrb[75].mxu1 }
 0x1ad   :  { %v1793_v31 = vmax.f32 %v1453_v9, 0.0 }
 0x1ae   :  { %v902_v34 = vpop.f32.mrb[76].mxu0  ;;  %v2567_v0 = vpop.f32.mrb[76].mxu1 }
 0x1af   :  { %v4145_v16 = vpack.c.bf16 %v1793_v31, %v1792_v2  ;;  %v1458_v45 = vadd.f32 %v1457_v18, %v902_v34  ;;  %v904_v24 = vpop.f32.mrb[77].mxu0  ;;  %v1497_v15 = vpop.f32.mrb[77].mxu1 }
 0x1b1   :  { %v1794_v7 = vmax.f32 %v1458_v45, 0.0 }
 0x1b2   :  { %v907_v19 = vpop.f32.mrb[78].mxu0  ;;  %v4147_v42 = vpop.f32.mrb[78].mxu1 }
 0x1b3   :  { %v1463_v43 = vadd.f32 %v2555_v61, %v907_v19  ;;  %v909_v44 = vpop.f32.mrb[79].mxu0  ;;  %v1507_v37 = vpop.f32.mrb[79].mxu1 }
 0x1b5   :  { %v1795_v50 = vmax.f32 %v1463_v43, 0.0 }
 0x1b6   :  { %v912_v51 = vpop.f32.mrb[80].mxu0  ;;  %v4149_v32 = vpop.f32.mrb[80].mxu1 }
 0x1b7   :  { %v4151_v48 = vpack.c.bf16 %v1795_v50, %v1794_v7  ;;  %v1468_v22 = vadd.f32 %v1467_v29, %v912_v51  ;;  %v914_v40 = vpop.f32.mrb[81].mxu0  ;;  %v4153_v53 = vpop.f32.mrb[81].mxu1 }
 0x1b9   :  { %v1796_v61 = vmax.f32 %v1468_v22, 0.0 }
 0x1ba   :  { %v917_v52 = vpop.f32.mrb[82].mxu0  ;;  %v4155_v59 = vpop.f32.mrb[82].mxu1 }
 0x1bb   :  { %v1473_v60 = vadd.f32 %v2558_v5, %v917_v52  ;;  %v919_v54 = vpop.f32.mrb[83].mxu0  ;;  %v4157_v35 = vpop.f32.mrb[83].mxu1  ;;  %v1877_v5 = vcombine.high %v4168_v13, %v4168_v13 }
 0x1bd   :  { %v1797_v4 = vmax.f32 %v1473_v60, 0.0  ;;  %2019 = vmatprep.mubr.f32.mxu1 %v1877_v5 }
 0x1be   :  { %v922_v18 = vpop.f32.mrb[84].mxu0  ;;  %v4159_v58 = vpop.f32.mrb[84].mxu1 }
 0x1bf   :  { %v4161_v56 = vpack.c.bf16 %v1797_v4, %v1796_v61  ;;  %v1478_v38 = vadd.f32 %v1477_v62, %v922_v18  ;;  %v924_v12 = vpop.f32.mrb[85].mxu0  ;;  %v4163_v29 = vpop.f32.mrb[85].mxu1 }
 0x1c1   :  { %v1798_v62 = vmax.f32 %v1478_v38, 0.0 }
 0x1c2   :  { %v927_v27 = vpop.f32.mrb[86].mxu0  ;;  %v4172_v6 = vpop.f32.mrb[86].mxu1 }
 0x1c3   :  { %v1483_v11 = vadd.f32 %v2561_v14, %v927_v27  ;;  %v929_v36 = vpop.f32.mrb[87].mxu0  ;;  %v4174_v9 = vpop.f32.mrb[87].mxu1 }
 0x1c5   :  { %v1799_v26 = vmax.f32 %v1483_v11, 0.0 }
 0x1c6   :  { %v932_v2 = vpop.f32.mrb[88].mxu0  ;;  %v4176_v31 = vpop.f32.mrb[88].mxu1 }
 0x1c7   :  { %v4178_v34 = vpack.c.bf16 %v1799_v26, %v1798_v62  ;;  %v1488_v45 = vadd.f32 %v1487_v28, %v932_v2  ;;  %v934_v24 = vpop.f32.mrb[89].mxu0  ;;  %v4180_v19 = vpop.f32.mrb[89].mxu1 }
 0x1c9   :  { %v1800_v51 = vmax.f32 %v1488_v45, 0.0 }
 0x1ca   :  { %v937_v43 = vpop.f32.mrb[90].mxu0  ;;  %v4182_v44 = vpop.f32.mrb[90].mxu1 }
 0x1cb   :  { %v1493_v7 = vadd.f32 %v2564_v23, %v937_v43  ;;  %v939_v50 = vpop.f32.mrb[91].mxu0  ;;  %v4184_v14 = vpop.f32.mrb[91].mxu1 }
 0x1cd   :  { %v1801_v22 = vmax.f32 %v1493_v7, 0.0 }
 0x1ce   :  { %v942_v40 = vpop.f32.mrb[92].mxu0  ;;  %v4186_v52 = vpop.f32.mrb[92].mxu1 }
 0x1cf   :  { %v4188_v60 = vpack.c.bf16 %v1801_v22, %v1800_v51  ;;  %v1498_v54 = vadd.f32 %v1497_v15, %v942_v40  ;;  %v944_v61 = vpop.f32.mrb[93].mxu0  ;;  %v4190_v28 = vpop.f32.mrb[93].mxu1 }
 0x1d1   :  { %v1802_v5 = vmax.f32 %v1498_v54, 0.0 }
 0x1d2   :  { %v947_v4 = vpop.f32.mrb[94].mxu0  ;;  %v4192_v18 = vpop.f32.mrb[94].mxu1 }
 0x1d3   :  { %v1503_v38 = vadd.f32 %v2567_v0, %v947_v4  ;;  %v949_v12 = vpop.f32.mrb[95].mxu0  ;;  %v4194_v23 = vpop.f32.mrb[95].mxu1 }
 0x1d5   :  { %v1803_v27 = vmax.f32 %v1503_v38, 0.0 }
 0x1d6   :  { %v952_v11 = vpop.f32.mrb[96].mxu0  ;;  %v4196_v36 = vpop.f32.mrb[96].mxu1 }
 0x1d7   :  { %v4198_v62 = vpack.c.bf16 %v1803_v27, %v1802_v5  ;;  %v1508_v26 = vadd.f32 %v1507_v37, %v952_v11  ;;  %v954_v2 = vpop.f32.mrb[97].mxu0  ;;  %v4200_v15 = vpop.f32.mrb[97].mxu1 }
 0x1d9   :  { %v1804_v50 = vmax.f32 %v1508_v26, 0.0 }
 0x1da   :  { %v957_v45 = vpop.f32.mrb[98].mxu0  ;;  %v4202_v24 = vpop.f32.mrb[98].mxu1 }
 0x1db   :  { %v1513_v43 = vadd.f32 %v4147_v42, %v957_v45  ;;  %v959_v0 = vpop.f32.mrb[99].mxu0  ;;  %v4205_v7 = vpop.f32.mrb[99].mxu1 }
 0x1dd   :  { %v1805_v51 = vmax.f32 %v1513_v43, 0.0 }
 0x1de   :  { %v962_v22 = vpop.f32.mrb[100].mxu0  ;;  %v4207_v40 = vpop.f32.mrb[100].mxu1 }
 0x1df   :  { %v2730_v54 = vpack.c.bf16 %v1805_v51, %v1804_v50  ;;  %v1518_v61 = vadd.f32 %v4153_v53, %v962_v22  ;;  %v964_v37 = vpop.f32.mrb[101].mxu0  ;;  %v4210_v4 = vpop.f32.mrb[101].mxu1 }
 0x1e1   :  { %2731 = vmatprep.subr.bf16.mxu1 %v2730_v54  ;;  %v1806_v11 = vmax.f32 %v1518_v61, 0.0 }
 0x1e2   :  { %v967_v38 = vpop.f32.mrb[102].mxu0  ;;  %2733 = vmatpush3.bf16.msra.mxu1 %v4141_v46  ;;  %v4213_v12 = vpop.f32.mrb[102].mxu1 }
 0x1e3   :  { %v1523_v42 = vadd.f32 %v4149_v32, %v967_v38  ;;  %v969_v5 = vpop.f32.mrb[103].mxu0  ;;  %v4216_v27 = vpop.f32.mrb[103].mxu1 }
 0x1e5   :  { %v1807_v26 = vmax.f32 %v1523_v42, 0.0 }
 0x1e6   :  { %v972_v2 = vpop.f32.mrb[104].mxu0  ;;  %v4218_v45 = vpop.f32.mrb[104].mxu1 }
 0x1e7   :  { %v2734_v53 = vpack.c.bf16 %v1807_v26, %v1806_v11  ;;  %v1528_v43 = vadd.f32 %v4157_v35, %v972_v2  ;;  %v974_v0 = vpop.f32.mrb[105].mxu0  ;;  %v4221_v50 = vpop.f32.mrb[105].mxu1 }
 0x1e9   :  { %2735 = vmatprep.subr.bf16.mxu1 %v2734_v53  ;;  %v1808_v61 = vmax.f32 %v1528_v43, 0.0 }
 0x1ea   :  { %v977_v46 = vpop.f32.mrb[106].mxu0  ;;  %2737 = vmatpush3.bf16.msra.mxu1 %v4143_v21  ;;  %v4224_v51 = vpop.f32.mrb[106].mxu1 }
 0x1eb   :  { %v1533_v32 = vadd.f32 %v4155_v59, %v977_v46  ;;  %v979_v22 = vpop.f32.mrb[107].mxu0  ;;  %v4227_v54 = vpop.f32.mrb[107].mxu1 }
 0x1ed   :  { %v1809_v37 = vmax.f32 %v1533_v32, 0.0 }
 0x1ee   :  { %v982_v38 = vpop.f32.mrb[108].mxu0  ;;  %v4229_v42 = vpop.f32.mrb[108].mxu1 }
 0x1ef   :  { %v2738_v35 = vpack.c.bf16 %v1809_v37, %v1808_v61  ;;  %v1538_v5 = vadd.f32 %v4163_v29, %v982_v38  ;;  %v984_v11 = vpop.f32.mrb[109].mxu0  ;;  %v4232_v26 = vpop.f32.mrb[109].mxu1 }
 0x1f1   :  { %2739 = vmatprep.subr.bf16.mxu1 %v2738_v35  ;;  %v1810_v0 = vmax.f32 %v1538_v5, 0.0 }
 0x1f2   :  { %v987_v21 = vpop.f32.mrb[110].mxu0  ;;  %2741 = vmatpush3.bf16.msra.mxu1 %v4145_v16  ;;  %v4235_v2 = vpop.f32.mrb[110].mxu1 }
 0x1f3   :  { %v1543_v59 = vadd.f32 %v4159_v58, %v987_v21  ;;  %v989_v53 = vpop.f32.mrb[111].mxu0  ;;  %v4238_v43 = vpop.f32.mrb[111].mxu1 }
 0x1f5   :  { %v1811_v46 = vmax.f32 %v1543_v59, 0.0 }
 0x1f6   :  { %v992_v32 = vpop.f32.mrb[112].mxu0  ;;  %v2621_v22 = vpop.f32.mrb[112].mxu1 }
 0x1f7   :  { %v2742_v61 = vpack.c.bf16 %v1811_v46, %v1810_v0  ;;  %v1548_v29 = vadd.f32 %v4174_v9, %v992_v32  ;;  %v4242_v37 = vadd.f32 %v2621_v22, %v3766_v17  ;;  %v994_v38 = vpop.f32.mrb[113].mxu0  ;;  %v4244_v35 = vpop.f32.mrb[113].mxu1 }
 0x1f9   :  { %4364 = vst [vmem:[#allocation5_spill] sm:$0xff] %v4242_v37  ;;  %2743 = vmatprep.subr.bf16.mxu1 %v2742_v61  ;;  %v1812_v9 = vmax.f32 %v1548_v29, 0.0 }
 0x1fa   :  { %v997_v16 = vpop.f32.mrb[114].mxu0  ;;  %v2624_v11 = vpop.f32.mrb[114].mxu1  ;;  %2745 = vmatpush3.bf16.msra.mxu1 %v4151_v48 }
 0x1fb   :  { %v1553_v58 = vadd.f32 %v4172_v6, %v997_v16  ;;  %v1693_v5 = vadd.f32 %v2624_v11, %v3802_v33  ;;  %v999_v21 = vpop.f32.mrb[115].mxu0  ;;  %v1687_v59 = vpop.f32.mrb[115].mxu1 }
 0x1fc   :  { %v1688_v53 = vadd.f32 %v1687_v59, %v3784_v25 }
 0x1fd   :  { %v1813_v0 = vmax.f32 %v1553_v58, 0.0  ;;  %v1841_v17 = vmax.f32 %v1693_v5, 0.0 }
 0x1fe   :  { %v1840_v46 = vmax.f32 %v1688_v53, 0.0  ;;  %v1002_v32 = vpop.f32.mrb[116].mxu0  ;;  %v2627_v22 = vpop.f32.mrb[116].mxu1 }
 0x1ff   :  { %v2746_v38 = vpack.c.bf16 %v1813_v0, %v1812_v9  ;;  %v1558_v61 = vadd.f32 %v4180_v19, %v1002_v32  ;;  %v1703_v3 = vadd.f32 %v2627_v22, %v3838_v49  ;;  %v1004_v48 = vpop.f32.mrb[117].mxu0  ;;  %v1697_v37 = vpop.f32.mrb[117].mxu1 }
 0x200   :  { %v4252_v6 = vpack.c.bf16 %v1841_v17, %v1840_v46  ;;  %v1698_v33 = vadd.f32 %v1697_v37, %v3820_v41  ;;  %v2863_v17 = vmov 0  }
 0x201   :  { %v1843_v16 = vmax.f32 %v1703_v3, 0.0  ;;  %2747 = vmatprep.subr.bf16.mxu1 %v2746_v38  ;;  %v1814_v53 = vmax.f32 %v1558_v61, 0.0  ;;  %v1858_v3 = vld [vmem:[%s4360_s4] sm:$0xf]  ;;  %2834 = vset.pattern.permute.xlu0 %v2863_v17 }
 0x202   :  { %v1842_v25 = vmax.f32 %v1698_v33, 0.0  ;;  %v1007_v29 = vpop.f32.mrb[118].mxu0  ;;  %v2630_v11 = vpop.f32.mrb[118].mxu1  ;;  %2749 = vmatpush3.bf16.msra.mxu1 %v4161_v56  ;;  %1862 = vperm.xlu0 %2834, %v1858_v3   ;;  %v2165_v61 = vld [vmem:[%s4361_s5] sm:$0xf] }
 0x203   :  { %v1563_v58 = vadd.f32 %v4176_v31, %v1007_v29  ;;  %v1713_v5 = vadd.f32 %v2630_v11, %v3874_v1  ;;  %v1009_v19 = vpop.f32.mrb[119].mxu0  ;;  %v1707_v21 = vpop.f32.mrb[119].mxu1 }
 0x204   :  { %v4258_v49 = vpack.c.bf16 %v1843_v16, %v1842_v25  ;;  %v1708_v59 = vadd.f32 %v1707_v21, %v3856_v57 }
 0x205   :  { %v1815_v9 = vmax.f32 %v1563_v58, 0.0  ;;  %v1845_v41 = vmax.f32 %v1713_v5, 0.0 }
 0x206   :  { %v1844_v37 = vmax.f32 %v1708_v59, 0.0  ;;  %v1012_v0 = vpop.f32.mrb[120].mxu0  ;;  %v2633_v56 = vpop.f32.mrb[120].mxu1  ;;  %2168 = vperm.xlu0 %2834, %v2165_v61  }
 0x207   :  { %v2750_v31 = vpack.c.bf16 %v1815_v9, %v1814_v53  ;;  %v1568_v1 = vadd.f32 %v4184_v14, %v1012_v0  ;;  %v1723_v46 = vadd.f32 %v2633_v56, %v3910_v20  ;;  %v1014_v32 = vpop.f32.mrb[121].mxu0  ;;  %v1717_v22 = vpop.f32.mrb[121].mxu1 }
 0x208   :  { %v4266_v57 = vpack.c.bf16 %v1845_v41, %v1844_v37  ;;  %v1718_v38 = vadd.f32 %v1717_v22, %v3892_v10 }
 0x209   :  { %v1847_v48 = vmax.f32 %v1723_v46, 0.0  ;;  %2751 = vmatprep.subr.bf16.mxu1 %v2750_v31  ;;  %v1816_v5 = vmax.f32 %v1568_v1, 0.0 }
 0x20a   :  { %v1846_v33 = vmax.f32 %v1718_v38, 0.0  ;;  %v1017_v16 = vpop.f32.mrb[122].mxu0  ;;  %v2636_v25 = vpop.f32.mrb[122].mxu1  ;;  %2753 = vmatpush3.bf16.msra.mxu1 %v4178_v34 }
 0x20b   :  { %v1573_v20 = vadd.f32 %v4182_v44, %v1017_v16  ;;  %v1733_v14 = vadd.f32 %v2636_v25, %v3943_v39  ;;  %v1019_v29 = vpop.f32.mrb[123].mxu0  ;;  %v1727_v11 = vpop.f32.mrb[123].mxu1 }
 0x20c   :  { %v4275_v58 = vpack.c.bf16 %v1847_v48, %v1846_v33  ;;  %v1728_v10 = vadd.f32 %v1727_v11, %v3928_v30 }
 0x20d   :  { %v1817_v19 = vmax.f32 %v1573_v20, 0.0  ;;  %v1849_v21 = vmax.f32 %v1733_v14, 0.0 }
 0x20e   :  { %v1848_v59 = vmax.f32 %v1728_v10, 0.0  ;;  %v1022_v53 = vpop.f32.mrb[124].mxu0  ;;  %v2639_v9 = vpop.f32.mrb[124].mxu1 }
 0x20f   :  { %v2754_v41 = vpack.c.bf16 %v1817_v19, %v1816_v5  ;;  %v1578_v34 = vadd.f32 %v4190_v28, %v1022_v53  ;;  %v1743_v44 = vadd.f32 %v2639_v9, %v3964_v55  ;;  %v1024_v3 = vpop.f32.mrb[125].mxu0  ;;  %v1737_v39 = vpop.f32.mrb[125].mxu1 }
 0x210   :  { %v4280_v37 = vpack.c.bf16 %v1849_v21, %v1848_v59  ;;  %v1738_v0 = vadd.f32 %v1737_v39, %v3954_v47 }
 0x211   :  { %v1851_v56 = vmax.f32 %v1743_v44, 0.0  ;;  %2755 = vmatprep.subr.bf16.mxu1 %v2754_v41  ;;  %v1818_v38 = vmax.f32 %v1578_v34, 0.0 }
 0x212   :  { %v1850_v30 = vmax.f32 %v1738_v0, 0.0  ;;  %v1027_v17 = vpop.f32.mrb[126].mxu0  ;;  %v2642_v31 = vpop.f32.mrb[126].mxu1  ;;  %2757 = vmatpush3.bf16.msra.mxu1 %v4188_v60 }
 0x213   :  { %v1583_v1 = vadd.f32 %v4186_v52, %v1027_v17  ;;  %v1753_v46 = vadd.f32 %v2642_v31, %v3984_v8  ;;  %v1029_v28 = vpop.f32.mrb[127].mxu0  ;;  %v1747_v32 = vpop.f32.mrb[127].mxu1  ;;  %v4293_v52 = vld [vmem:[%s4359_s3 + $0x10] sm:$0xff] }
 0x214   :  { %v4286_v55 = vpack.c.bf16 %v1851_v56, %v1850_v30  ;;  %v1748_v22 = vadd.f32 %v1747_v32, %v3974_v63  ;;  %v1878_v63 = vcombine.high %v4293_v52, %v4293_v52 }
 0x215   :  { %v1819_v61 = vmax.f32 %v1583_v1, 0.0  ;;  %v1853_v47 = vmax.f32 %v1753_v46, 0.0 }
 0x216   :  { %v1852_v48 = vmax.f32 %v1748_v22, 0.0  ;;  %v1032_v33 = vpop.f32.mrb[128].mxu0 }
 0x217   :  { %v2758_v16 = vpack.c.bf16 %v1819_v61, %v1818_v38  ;;  %v1588_v25 = vadd.f32 %v4194_v23, %v1032_v33  ;;  %v1034_v20 = vpop.f32.mrb[129].mxu0 }
 0x218   :  { %v4295_v8 = vpack.c.bf16 %v1853_v47, %v1852_v48 }
 0x219   :  { %2759 = vmatprep.subr.bf16.mxu1 %v2758_v16  ;;  %v1820_v11 = vmax.f32 %v1588_v25, 0.0 }
 0x21a   :  { %v1037_v60 = vpop.f32.mrb[130].mxu0  ;;  %2761 = vmatpush3.bf16.msra.mxu1 %v4198_v62 }
 0x21b   :  { %v1593_v14 = vadd.f32 %v4192_v18, %v1037_v60  ;;  %v1039_v29 = vpop.f32.mrb[131].mxu0 }
 0x21d   :  { %v1821_v23 = vmax.f32 %v1593_v14, 0.0  ;;  %2020 = vmatmul.mubr.f32.vlgmr.msra.gmra.mrb[130].mxu1 %v4168_v13 }
 0x21e   :  { %v1042_v10 = vpop.f32.mrb[132].mxu0  ;;  %2089 = vmatprep.mubr.f32.mxu1 %v1878_v63 }
 0x21f   :  { %v4302_v5 = vpack.c.bf16 %v1821_v23, %v1820_v11  ;;  %v1598_v19 = vadd.f32 %v4200_v15, %v1042_v10  ;;  %v1044_v21 = vpop.f32.mrb[133].mxu0 }
 0x221   :  { %v1822_v9 = vmax.f32 %v1598_v19, 0.0 }
 0x222   :  { %v1047_v59 = vpop.f32.mrb[134].mxu0 }
 0x223   :  { %v1603_v62 = vadd.f32 %v4196_v36, %v1047_v59  ;;  %v1049_v53 = vpop.f32.mrb[135].mxu0 }
 0x225   :  { %v1823_v41 = vmax.f32 %v1603_v62, 0.0 }
 0x226   :  { %v1052_v34 = vpop.f32.mrb[136].mxu0 }
 0x227   :  { %v4306_v18 = vpack.c.bf16 %v1823_v41, %v1822_v9  ;;  %v1608_v44 = vadd.f32 %v4205_v7, %v1052_v34  ;;  %v1054_v3 = vpop.f32.mrb[137].mxu0 }
 0x229   :  { %v1824_v56 = vmax.f32 %v1608_v44, 0.0 }
 0x22a   :  { %v1057_v13 = vpop.f32.mrb[138].mxu0 }
 0x22b   :  { %v1613_v39 = vadd.f32 %v4202_v24, %v1057_v13  ;;  %v1059_v0 = vpop.f32.mrb[139].mxu0 }
 0x22d   :  { %v1825_v30 = vmax.f32 %v1613_v39, 0.0 }
 0x22e   :  { %v1062_v15 = vpop.f32.mrb[140].mxu0 }
 0x22f   :  { %v4310_v17 = vpack.c.bf16 %v1825_v30, %v1824_v56  ;;  %v1618_v36 = vadd.f32 %v4210_v4, %v1062_v15  ;;  %v1064_v31 = vpop.f32.mrb[141].mxu0 }
 0x231   :  { %v1826_v32 = vmax.f32 %v1618_v36, 0.0 }
 0x232   :  { %v1067_v1 = vpop.f32.mrb[142].mxu0 }
 0x233   :  { %v1623_v46 = vadd.f32 %v4207_v40, %v1067_v1  ;;  %v1069_v28 = vpop.f32.mrb[143].mxu0 }
 0x235   :  { %v1827_v22 = vmax.f32 %v1623_v46, 0.0 }
 0x236   :  { %v1072_v7 = vpop.f32.mrb[144].mxu0 }
 0x237   :  { %v2776_v38 = vpack.c.bf16 %v1827_v22, %v1826_v32  ;;  %v1628_v61 = vadd.f32 %v4216_v27, %v1072_v7  ;;  %v1074_v24 = vpop.f32.mrb[145].mxu0 }
 0x239   :  { %v1828_v16 = vmax.f32 %v1628_v61, 0.0 }
 0x23a   :  { %v1077_v47 = vpop.f32.mrb[146].mxu0 }
 0x23b   :  { %v1633_v48 = vadd.f32 %v4213_v12, %v1077_v47  ;;  %v1079_v33 = vpop.f32.mrb[147].mxu0 }
 0x23d   :  { %v1829_v25 = vmax.f32 %v1633_v48, 0.0 }
 0x23e   :  { %v1082_v20 = vpop.f32.mrb[148].mxu0 }
 0x23f   :  { %v2780_v4 = vpack.c.bf16 %v1829_v25, %v1828_v16  ;;  %v1638_v60 = vadd.f32 %v4221_v50, %v1082_v20  ;;  %v1084_v63 = vpop.f32.mrb[149].mxu0 }
 0x241   :  { %v1830_v11 = vmax.f32 %v1638_v60, 0.0 }
 0x242   :  { %v1087_v40 = vpop.f32.mrb[150].mxu0 }
 0x243   :  { %v1643_v14 = vadd.f32 %v4218_v45, %v1087_v40  ;;  %v1089_v29 = vpop.f32.mrb[151].mxu0 }
 0x245   :  { %v1831_v23 = vmax.f32 %v1643_v14, 0.0 }
 0x246   :  { %v1092_v10 = vpop.f32.mrb[152].mxu0 }
 0x247   :  { %v2784_v27 = vpack.c.bf16 %v1831_v23, %v1830_v11  ;;  %v1648_v19 = vadd.f32 %v4227_v54, %v1092_v10  ;;  %v1094_v21 = vpop.f32.mrb[153].mxu0 }
 0x249   :  { %v1832_v53 = vmax.f32 %v1648_v19, 0.0 }
 0x24a   :  { %v1097_v12 = vpop.f32.mrb[154].mxu0 }
 0x24b   :  { %v1653_v59 = vadd.f32 %v4224_v51, %v1097_v12  ;;  %v1099_v62 = vpop.f32.mrb[155].mxu0 }
 0x24d   :  { %v1833_v9 = vmax.f32 %v1653_v59, 0.0 }
 0x24e   :  { %v1102_v41 = vpop.f32.mrb[156].mxu0 }
 0x24f   :  { %v2788_v50 = vpack.c.bf16 %v1833_v9, %v1832_v53  ;;  %v1658_v34 = vadd.f32 %v4232_v26, %v1102_v41  ;;  %v1104_v44 = vpop.f32.mrb[157].mxu0 }
 0x251   :  { %v1834_v39 = vmax.f32 %v1658_v34, 0.0 }
 0x252   :  { %v1107_v45 = vpop.f32.mrb[158].mxu0 }
 0x253   :  { %v1663_v3 = vadd.f32 %v4229_v42, %v1107_v45  ;;  %v1109_v13 = vpop.f32.mrb[159].mxu0  ;;  %v4365_v42 = vld [vmem:[#allocation5_spill] sm:$0xff] }
 0x254   :  { %v1839_v7 = vmax.f32 %v4365_v42, 0.0 }
 0x255   :  { %v1835_v0 = vmax.f32 %v1663_v3, 0.0 }
 0x256   :  { %v1112_v56 = vpop.f32.mrb[160].mxu0 }
 0x257   :  { %v2792_v54 = vpack.c.bf16 %v1835_v0, %v1834_v39  ;;  %v1668_v30 = vadd.f32 %v4238_v43, %v1112_v56  ;;  %v1114_v15 = vpop.f32.mrb[161].mxu0 }
 0x259   :  { %v1836_v1 = vmax.f32 %v1668_v30, 0.0 }
 0x25a   :  { %v1117_v51 = vpop.f32.mrb[162].mxu0 }
 0x25b   :  { %v1673_v36 = vadd.f32 %v4235_v2, %v1117_v51  ;;  %v1119_v31 = vpop.f32.mrb[163].mxu0 }
 0x25d   :  { %v1837_v46 = vmax.f32 %v1673_v36, 0.0 }
 0x25e   :  { %v1122_v28 = vpop.f32.mrb[164].mxu0 }
 0x25f   :  { %v2762_v26 = vpack.c.bf16 %v1837_v46, %v1836_v1  ;;  %v1678_v32 = vadd.f32 %v4244_v35, %v1122_v28  ;;  %v1124_v22 = vpop.f32.mrb[165].mxu0 }
 0x261   :  { %v1838_v61 = vmax.f32 %v1678_v32, 0.0  ;;  %2763 = vmatprep.subr.bf16.mxu1 %v2762_v26 }
 0x262   :  { %2765 = vmatpush3.bf16.msra.mxu1 %v4302_v5 }
 0x263   :  { %v2766_v24 = vpack.c.bf16 %v1839_v7, %v1838_v61 }
 0x265   :  { %2767 = vmatprep.subr.bf16.mxu1 %v2766_v24 }
 0x266   :  { %2769 = vmatpush3.bf16.msra.mxu1 %v4306_v18 }
 0x267   :  { %2771 = vmatprep.subr.bf16.mxu1 %v4252_v6  ;;  %v4366_v6 = vmov 0.0|0.0  }
 0x26a   :  { %2773 = vmatpush3.bf16.msra.mxu1 %v4310_v17 }
 0x26b   :  { %2775 = vmatprep.subr.bf16.mxu1 %v4258_v49  ;;  %v2865_v49 = vmov 0.0  }
 0x26e   :  { %2777 = vmatpush3.bf16.msra.mxu1 %v2776_v38 }
 0x26f   :  { %2779 = vmatprep.subr.bf16.mxu1 %v4266_v57  ;;  %v1857_v57 = vld [vmem:[%s4359_s3 + $0x18] sm:$0xf]  ;;  %s2866_s3 = smov [#allocation2]  }
 0x270   :  { %v2418_v2 = vpop.f32.mrb[128].mxu1  ;;  %s2179_s14 = sshll.u32 %s2866_s3, 4  ;;  %s2180_s14 = int_to_ptr.vmem [resolvable:$true] %s2179_s14 }
 0x271   :  { %v2419_v43 = vpop.f32.mrb[129].mxu1  ;;  %p2843_p1 = scmp.lt.s32.totalorder %s2180_s14, %s2180_s14 }
 0x272   :  { %2781 = vmatpush3.bf16.msra.mxu1 %v2780_v4  ;;  %v2420_v35 = vadd.f32 %v2419_v43, %v2418_v2 }
 0x273   :  { %2783 = vmatprep.subr.bf16.mxu1 %v4275_v58  ;;  %v2285_v58 = vld [vmem:[%s4357_s1] ss:$0 sm:$0xff]  ;;  %s2838_s1 = scalar_lea.vmem %s2180_s14, 64 }
 0x274   :  { %p2839_p0 = scmp.ne.s32.totalorder %s2180_s14, %s2838_s1  ;;  %p2844_p2 = scmp.lt.s32.totalorder %s2838_s1, %s2838_s1 }
 0x276   :  { %2785 = vmatpush3.bf16.msra.mxu1 %v2784_v27  ;;  %p2845_p3 = por %p2844_p2, %p2843_p1 }
 0x277   :  { %2787 = vmatprep.subr.bf16.mxu1 %v4280_v37 }
 0x278   :  { %p2846_p4 = pnand %p2845_p3, %p2839_p0 }
 0x27a   :  { %2789 = vmatpush3.bf16.msra.mxu1 %v2788_v50 }
 0x27b   :  { %2791 = vmatprep.subr.bf16.mxu1 %v4286_v55 }
 0x27e   :  { %2793 = vmatpush3.bf16.msra.mxu1 %v2792_v54 }
 0x27f   :  { %2794 = vmatprep.subr.bf16.mxu1 %v4366_v6 }
 0x281   :  { %2090 = vmatmul.mubr.f32.vlgmr.msra.gmra.mrb[132].mxu1 %v4293_v52  ;;  %v1863_v37 = vpop.permute.xlu0 %1862 }
 0x282   :  { %2796 = vmatpush3.bf16.msra.mxu1 %v4295_v8  ;;  %2647 = vmatprep.mubr.msk.f32.mxu1 %vm2864_vm1, %v2865_v49  ;;  %v1871_v55 = vmul.f32 %v2285_v58, %v1863_v37 }
 0x284   :  { %v1952_v5 = vadd.f32 %v2420_v35, %v1871_v55 }
 0x285   :  { %2648 = vmatmul.mubr.msk.f32.vlgmr.msra.gmra.mrb[134].mxu1 %vm1882_vm2, %v1857_v57  ;;  %v2169_v4 = vpop.permute.xlu0 %2168 }
 0x2f0   :  { %v2453_v18 = vpop.f32.mrb[130].mxu1 }
 0x2f1   :  { %v2454_v52 = vpop.f32.mrb[131].mxu1 }
 0x2f2   :  { %v2455_v17 = vadd.f32 %v2454_v52, %v2453_v18 }
 0x2f4   :  { %v2022_v8 = vadd.f32 %v2455_v17, %v1952_v5 }
 0x354   :  { %v2488_v38 = vpop.f32.mrb[132].mxu1 }
 0x355   :  { %v2489_v47 = vpop.f32.mrb[133].mxu1 }
 0x356   :  { %v2490_v48 = vadd.f32 %v2489_v47, %v2488_v38 }
 0x358   :  { %v2092_v33 = vadd.f32 %v2490_v48, %v2022_v8  ;;  %v2161_v16 = vpop.f32.mrb[134].mxu1 }
 0x359   :  { %v2649_v25 = vpop.f32.mrb[135].mxu1 }
 0x35a   :  { %v2162_v20 = vadd.f32 %v2161_v16, %v2092_v33 }
 0x35c   :  { %v2171_v60 = vadd.f32 %v2169_v4, %v2162_v20 }
 0x35e   :  { %2172 = vst [vmem:[#allocation2] sm:$0xf] %v2171_v60 }
 0x35f   :  { %2849 = shalt.err (!%p2846_p4)
}
 0x360   :  { %s2850_s17 = scalar_lea.hbm %s4362_s6, 64 }
 0x361   :  { %p2851_p5 = scmp.ne.s32.totalorder %s4362_s6, %s2850_s17  ;;  %p2854_p6 = scmp.lt.u32.totalorder %s2850_s17, %s4362_s6 }
 0x363   :  { %p2856_p7 = pnand %p2854_p6, %p2851_p5 }
 0x365   :  { %2859 = shalt.err (!%p2856_p7)
}
 0x366   :  { %2182 = dma.vmem_to_hbm [thread:$0]  %s2180_s14, 64, %s4362_s6, [#allocation3]  }
 0x367   :  { %2860 = dma.done.wait [#allocation3], 64  }
 0x368   :  { %2861 = vsyncadd [#allocation3], 4294967232 }
 0x369   :  { %2186 = vsyncpa [#allocation3], 1 }

</bundles_post_ra>
